<compile_context>
chip_gen: v7x
topology: tpu7x:2x2x1
jax: 0.10.0
libtpu: 0.0.40
codegen_flags: <defaults>
</compile_context>

<pallas_src>
import math
import functools

import jax
import jax.numpy as jnp
from jax.experimental import pallas as pl
from jax.experimental.pallas import tpu as pltpu

# kanachan constant (reduced value for this synthetic test script).
NUM_TYPES_OF_ACTIONS = 30

MATMUL_DTYPE = jnp.float32   # set to jnp.bfloat16 on v6e/v7x for ~2x matmul throughput

_CPARAMS = pltpu.CompilerParams(
    dimension_semantics=("parallel",),
    vmem_limit_bytes=32 * 1024 * 1024,   # explicit limit; safe on v5e/v6e/v7x
)


# ----------------------------------------------------------------------------- specs
def _batched_spec(shape):
    """Block = one batch element, full remaining dims."""
    zeros = (0,) * (len(shape) - 1)
    return pl.BlockSpec((1,) + tuple(shape[1:]), lambda b: (b,) + zeros)


def _full_spec(shape):
    """Whole (un-tiled) array, identical block for every grid step (weights/biases)."""
    zeros = (0,) * len(shape)
    return pl.BlockSpec(tuple(shape), lambda b: zeros)


# ----------------------------------------------------------------------------- in-kernel helpers
def _mm(a, b):
    """Matmul with f32 accumulation (operands optionally cast to bf16 on v6e/v7x)."""
    return jnp.dot(a.astype(MATMUL_DTYPE), b.astype(MATMUL_DTYPE),
                   preferred_element_type=jnp.float32)


def _attention(x_q, x_kv, wq, wk, wv, bq, bk, bv, wo, bo, num_heads):
    """torch.nn.MultiheadAttention (batch_first, eval, no mask) for one batch element.

    x_q: (Tq, D), x_kv: (Tk, D); weights (in, out); biases (1, D).
    """
    Tq, D = x_q.shape
    dh = D // num_heads
    scale = 1.0 / math.sqrt(dh)

    # Full-width QKV projections: contraction depth D, good MXU utilization.
    Q = _mm(x_q, wq) + bq
    K = _mm(x_kv, wk) + bk
    V = _mm(x_kv, wv) + bv

    # Per-head scores / PV (statically unrolled); heads are concatenated so the
    # output projection below is a SINGLE full-width (Tq, D) @ (D, D) matmul.
    heads = []
    for h in range(num_heads):
        sl = slice(h * dh, (h + 1) * dh)
        s = jax.lax.dot_general(Q[:, sl] * scale, K[:, sl],
                                (((1,), (1,)), ((), ())),
                                preferred_element_type=jnp.float32)       # (Tq, Tk)
        s = s - jnp.max(s, axis=-1, keepdims=True)
        p = jnp.exp(s)
        # softmax denominator via EUP approx reciprocal (frees the VALU divide path)
        p = p * pl.reciprocal(jnp.sum(p, axis=-1, keepdims=True), approx=True)
        heads.append(jnp.dot(p.astype(MATMUL_DTYPE), V[:, sl].astype(MATMUL_DTYPE),
                             preferred_element_type=jnp.float32))         # (Tq, dh)
    o = jnp.concatenate(heads, axis=-1)                                   # (Tq, D)
    return _mm(o, wo) + bo


def _add_layernorm(x, y, gamma, beta):
    """LayerNorm(x + y) over the last dim (eps=1e-5, PyTorch default)."""
    z = x + y
    mean = jnp.mean(z, axis=-1, keepdims=True)
    zc = z - mean
    var = jnp.mean(zc * zc, axis=-1, keepdims=True)
    return zc * jax.lax.rsqrt(var + 1e-5) * gamma + beta


# ----------------------------------------------------------------------------- kernels
def decoder_layer_kernel(x_ref, mem_ref,
                         sa_wq, sa_wk, sa_wv, sa_bq, sa_bk, sa_bv, sa_wo, sa_bo,
                         ca_wq, ca_wk, ca_wv, ca_bq, ca_bk, ca_bv, ca_wo, ca_bo,
                         ff_w1, ff_b1, ff_w2, ff_b2,
                         ln1_g, ln1_b, ln2_g, ln2_b, ln3_g, ln3_b,
                         out_ref, *, num_heads):
    """One fused post-norm nn.TransformerDecoderLayer for one batch element."""
    x = x_ref[0].astype(jnp.float32)          # (Tc, D)
    mem = mem_ref[0].astype(jnp.float32)      # (Te, D)

    # self-attention block
    sa = _attention(x, x, sa_wq[...], sa_wk[...], sa_wv[...],
                    sa_bq[...], sa_bk[...], sa_bv[...], sa_wo[...], sa_bo[...],
                    num_heads)
    x = _add_layernorm(x, sa, ln1_g[...], ln1_b[...])

    # cross-attention block (memory = encoder output)
    ca = _attention(x, mem, ca_wq[...], ca_wk[...], ca_wv[...],
                    ca_bq[...], ca_bk[...], ca_bv[...], ca_wo[...], ca_bo[...],
                    num_heads)
    x = _add_layernorm(x, ca, ln2_g[...], ln2_b[...])

    # feed-forward block (linear -> ReLU -> linear)
    h = jnp.maximum(_mm(x, ff_w1[...]) + ff_b1[...], 0.0)
    ff = _mm(h, ff_w2[...]) + ff_b2[...]
    x = _add_layernorm(x, ff, ln3_g[...], ln3_b[...])

    out_ref[0] = x.astype(out_ref.dtype)


def head_kernel(x_ref, w1_ref, b1_ref, w2_ref, b2_ref, out_ref):
    """semifinal_linear -> ReLU -> final_linear (NFD -> 1) for one batch element.

    The final projection is a VPU multiply + lane reduction (no N=1 matmul) and
    the result is stored as a lane-dense (1, T) row.
    """
    x = x_ref[0].astype(jnp.float32)                                   # (T, D)
    h = jnp.maximum(_mm(x, w1_ref[...]) + b1_ref[...], 0.0)            # (T, NFD)
    score = jnp.sum(h * w2_ref[...], axis=-1, keepdims=True) + b2_ref[...]   # (T, 1)
    out_ref[0] = jnp.transpose(score).astype(out_ref.dtype)            # (1, T)


# ----------------------------------------------------------------------------- wrappers
def decoder_layer(x, mem, lp, num_heads):
    B, Tc, D = x.shape
    weights = (lp['sa_wq'], lp['sa_wk'], lp['sa_wv'], lp['sa_bq'], lp['sa_bk'], lp['sa_bv'],
               lp['sa_wo'], lp['sa_bo'],
               lp['ca_wq'], lp['ca_wk'], lp['ca_wv'], lp['ca_bq'], lp['ca_bk'], lp['ca_bv'],
               lp['ca_wo'], lp['ca_bo'],
               lp['ff_w1'], lp['ff_b1'], lp['ff_w2'], lp['ff_b2'],
               lp['ln1_g'], lp['ln1_b'], lp['ln2_g'], lp['ln2_b'], lp['ln3_g'], lp['ln3_b'])
    in_specs = ([_batched_spec(x.shape), _batched_spec(mem.shape)]
                + [_full_spec(w.shape) for w in weights])
    kernel = functools.partial(decoder_layer_kernel, num_heads=num_heads)
    return pl.pallas_call(
        kernel,
        out_shape=jax.ShapeDtypeStruct((B, Tc, D), x.dtype),
        grid=(B,),
        in_specs=in_specs,
        out_specs=_batched_spec((B, Tc, D)),
        compiler_params=_CPARAMS,
    )(x, mem, *weights)


def prediction_head(x, w1, b1, w2_row, b2):
    B, T, _ = x.shape
    out = pl.pallas_call(
        head_kernel,
        out_shape=jax.ShapeDtypeStruct((B, 1, T), x.dtype),
        grid=(B,),
        in_specs=[_batched_spec(x.shape),
                  _full_spec(w1.shape), _full_spec(b1.shape),
                  _full_spec(w2_row.shape), _full_spec(b2.shape)],
        out_specs=_batched_spec((B, 1, T)),
        compiler_params=_CPARAMS,
    )(x, w1, b1, w2_row, b2)
    return jnp.squeeze(out, axis=1)                                    # (B, T)


# ----------------------------------------------------------------------------- params
def init_decoder_params(key, num_dims, num_layers, dim_ff, num_final_dims):
    """Creates parameters in PyTorch layout, then converts ONCE to kernel layout:
    weights (in, out), biases (1, N).  No per-forward transposes/reshapes."""
    vocab = NUM_TYPES_OF_ACTIONS + 2
    counter = [0]

    def nrm(shape, scale=0.05):
        counter[0] += 1
        k = jax.random.fold_in(key, counter[0])
        return scale * jax.random.normal(k, shape, jnp.float32)

    def lin_t(out_dim, in_dim):
        # PyTorch nn.Linear stores (out, in); transpose once here to (in, out).
        return nrm((out_dim, in_dim)).T

    def bias_row(n):
        return nrm((n,)).reshape(1, n)

    emb = nrm((vocab, num_dims))
    emb = emb.at[NUM_TYPES_OF_ACTIONS + 1].set(0.0)   # padding_idx row -> zeros

    layers = []
    for _ in range(num_layers):
        layers.append(dict(
            # self-attention (split of in_proj_weight / in_proj_bias)
            sa_wq=lin_t(num_dims, num_dims), sa_wk=lin_t(num_dims, num_dims),
            sa_wv=lin_t(num_dims, num_dims),
            sa_bq=bias_row(num_dims), sa_bk=bias_row(num_dims), sa_bv=bias_row(num_dims),
            sa_wo=lin_t(num_dims, num_dims), sa_bo=bias_row(num_dims),
            # cross-attention
            ca_wq=lin_t(num_dims, num_dims), ca_wk=lin_t(num_dims, num_dims),
            ca_wv=lin_t(num_dims, num_dims),
            ca_bq=bias_row(num_dims), ca_bk=bias_row(num_dims), ca_bv=bias_row(num_dims),
            ca_wo=lin_t(num_dims, num_dims), ca_bo=bias_row(num_dims),
            # feed-forward
            ff_w1=lin_t(dim_ff, num_dims), ff_b1=bias_row(dim_ff),
            ff_w2=lin_t(num_dims, dim_ff), ff_b2=bias_row(num_dims),
            # layer norms (PyTorch default init: ones / zeros)
            ln1_g=jnp.ones((1, num_dims), jnp.float32), ln1_b=jnp.zeros((1, num_dims), jnp.float32),
            ln2_g=jnp.ones((1, num_dims), jnp.float32), ln2_b=jnp.zeros((1, num_dims), jnp.float32),
            ln3_g=jnp.ones((1, num_dims), jnp.float32), ln3_b=jnp.zeros((1, num_dims), jnp.float32),
        ))

    return dict(
        emb=emb,
        layers=layers,
        sf_w=lin_t(num_final_dims, num_dims), sf_b=bias_row(num_final_dims),
        fin_w=nrm((1, num_final_dims)),           # (1, NFD): used directly as a row
        fin_b=nrm((1,)).reshape(1, 1),
    )


# ----------------------------------------------------------------------------- forward
def decoder_forward(params, encode, candidates, num_heads):
    """Matches Decoder.forward in eval mode: returns (B, T_candidates)."""
    # Embedding lookup (glue; plain JAX gather).  Dropout layers are identity in eval.
    x = params['emb'][candidates]                                      # (B, Tc, D)

    # nn.TransformerDecoder with post-norm TransformerDecoderLayer (norm_first=False):
    # one fused Pallas kernel per layer.
    for lp in params['layers']:
        x = decoder_layer(x, encode, lp, num_heads)

    # semifinal_linear -> ReLU -> (dropout) -> final_linear, fused head kernel.
    return prediction_head(x, params['sf_w'], params['sf_b'],
                           params['fin_w'], params['fin_b'])           # (B, Tc)


# ----------------------------------------------------------------------------- main
if __name__ == "__main__":
    B = 2            # batch
    T_ENC = 16       # encoder memory sequence length
    T_CAND = 8       # candidate sequence length
    D = 32           # num_dimensions
    H = 4            # num_heads
    L = 2            # num_layers
    DFF = 64         # dim_feedforward (PyTorch default 2048; reduced for small test)
    NFD = 64         # num_final_dimensions (default 2048; reduced for small test)

    root = jax.random.PRNGKey(0)
    k_params, k_enc, k_cand = jax.random.split(root, 3)

    params = init_decoder_params(k_params, D, L, DFF, NFD)
    encode = jax.random.normal(k_enc, (B, T_ENC, D), jnp.float32)
    candidates = jax.random.randint(k_cand, (B, T_CAND), 0, NUM_TYPES_OF_ACTIONS + 2,
                                    dtype=jnp.int32)

    prediction = decoder_forward(params, encode, candidates, num_heads=H)
    prediction = jax.block_until_ready(prediction)

    assert prediction.shape == (B, T_CAND), prediction.shape
    assert prediction.dtype == jnp.float32
    assert bool(jnp.all(jnp.isfinite(prediction)))
    print("KERNEL_OK")
</pallas_src>

<mosaic_0001>
module attributes {stable_mosaic.version = 11 : i64} {
  func.func @decoder_layer_kernel(%arg0: i32, %arg1: memref<1x8x32xf32, #tpu.memory_space<vmem>>, %arg2: memref<1x16x32xf32, #tpu.memory_space<vmem>>, %arg3: memref<32x32xf32, #tpu.memory_space<vmem>>, %arg4: memref<32x32xf32, #tpu.memory_space<vmem>>, %arg5: memref<32x32xf32, #tpu.memory_space<vmem>>, %arg6: memref<1x32xf32, #tpu.memory_space<vmem>>, %arg7: memref<1x32xf32, #tpu.memory_space<vmem>>, %arg8: memref<1x32xf32, #tpu.memory_space<vmem>>, %arg9: memref<32x32xf32, #tpu.memory_space<vmem>>, %arg10: memref<1x32xf32, #tpu.memory_space<vmem>>, %arg11: memref<32x32xf32, #tpu.memory_space<vmem>>, %arg12: memref<32x32xf32, #tpu.memory_space<vmem>>, %arg13: memref<32x32xf32, #tpu.memory_space<vmem>>, %arg14: memref<1x32xf32, #tpu.memory_space<vmem>>, %arg15: memref<1x32xf32, #tpu.memory_space<vmem>>, %arg16: memref<1x32xf32, #tpu.memory_space<vmem>>, %arg17: memref<32x32xf32, #tpu.memory_space<vmem>>, %arg18: memref<1x32xf32, #tpu.memory_space<vmem>>, %arg19: memref<32x64xf32, #tpu.memory_space<vmem>>, %arg20: memref<1x64xf32, #tpu.memory_space<vmem>>, %arg21: memref<64x32xf32, #tpu.memory_space<vmem>>, %arg22: memref<1x32xf32, #tpu.memory_space<vmem>>, %arg23: memref<1x32xf32, #tpu.memory_space<vmem>>, %arg24: memref<1x32xf32, #tpu.memory_space<vmem>>, %arg25: memref<1x32xf32, #tpu.memory_space<vmem>>, %arg26: memref<1x32xf32, #tpu.memory_space<vmem>>, %arg27: memref<1x32xf32, #tpu.memory_space<vmem>>, %arg28: memref<1x32xf32, #tpu.memory_space<vmem>>, %arg29: memref<1x8x32xf32, #tpu.memory_space<vmem>>) attributes {dimension_semantics = [#tpu.dimension_semantics<parallel>], iteration_bounds = array<i64: 2>, scalar_prefetch = 0 : i64, scratch_operands = 0 : i64, tpu.core_type = #tpu.core_type<tc>, window_params = [{transform_indices = @transform_0, window_bounds = array<i64: 1, 8, 32>}, {transform_indices = @transform_1, window_bounds = array<i64: 1, 16, 32>}, {pipeline_mode = #tpu.pipeline_mode<synchronous>, transform_indices = @transform_2, window_bounds = array<i64: 32, 32>}, {pipeline_mode = #tpu.pipeline_mode<synchronous>, transform_indices = @transform_3, window_bounds = array<i64: 32, 32>}, {pipeline_mode = #tpu.pipeline_mode<synchronous>, transform_indices = @transform_4, window_bounds = array<i64: 32, 32>}, {pipeline_mode = #tpu.pipeline_mode<synchronous>, transform_indices = @transform_5, window_bounds = array<i64: 1, 32>}, {pipeline_mode = #tpu.pipeline_mode<synchronous>, transform_indices = @transform_6, window_bounds = array<i64: 1, 32>}, {pipeline_mode = #tpu.pipeline_mode<synchronous>, transform_indices = @transform_7, window_bounds = array<i64: 1, 32>}, {pipeline_mode = #tpu.pipeline_mode<synchronous>, transform_indices = @transform_8, window_bounds = array<i64: 32, 32>}, {pipeline_mode = #tpu.pipeline_mode<synchronous>, transform_indices = @transform_9, window_bounds = array<i64: 1, 32>}, {pipeline_mode = #tpu.pipeline_mode<synchronous>, transform_indices = @transform_10, window_bounds = array<i64: 32, 32>}, {pipeline_mode = #tpu.pipeline_mode<synchronous>, transform_indices = @transform_11, window_bounds = array<i64: 32, 32>}, {pipeline_mode = #tpu.pipeline_mode<synchronous>, transform_indices = @transform_12, window_bounds = array<i64: 32, 32>}, {pipeline_mode = #tpu.pipeline_mode<synchronous>, transform_indices = @transform_13, window_bounds = array<i64: 1, 32>}, {pipeline_mode = #tpu.pipeline_mode<synchronous>, transform_indices = @transform_14, window_bounds = array<i64: 1, 32>}, {pipeline_mode = #tpu.pipeline_mode<synchronous>, transform_indices = @transform_15, window_bounds = array<i64: 1, 32>}, {pipeline_mode = #tpu.pipeline_mode<synchronous>, transform_indices = @transform_16, window_bounds = array<i64: 32, 32>}, {pipeline_mode = #tpu.pipeline_mode<synchronous>, transform_indices = @transform_17, window_bounds = array<i64: 1, 32>}, {pipeline_mode = #tpu.pipeline_mode<synchronous>, transform_indices = @transform_18, window_bounds = array<i64: 32, 64>}, {pipeline_mode = #tpu.pipeline_mode<synchronous>, transform_indices = @transform_19, window_bounds = array<i64: 1, 64>}, {pipeline_mode = #tpu.pipeline_mode<synchronous>, transform_indices = @transform_20, window_bounds = array<i64: 64, 32>}, {pipeline_mode = #tpu.pipeline_mode<synchronous>, transform_indices = @transform_21, window_bounds = array<i64: 1, 32>}, {pipeline_mode = #tpu.pipeline_mode<synchronous>, transform_indices = @transform_22, window_bounds = array<i64: 1, 32>}, {pipeline_mode = #tpu.pipeline_mode<synchronous>, transform_indices = @transform_23, window_bounds = array<i64: 1, 32>}, {pipeline_mode = #tpu.pipeline_mode<synchronous>, transform_indices = @transform_24, window_bounds = array<i64: 1, 32>}, {pipeline_mode = #tpu.pipeline_mode<synchronous>, transform_indices = @transform_25, window_bounds = array<i64: 1, 32>}, {pipeline_mode = #tpu.pipeline_mode<synchronous>, transform_indices = @transform_26, window_bounds = array<i64: 1, 32>}, {pipeline_mode = #tpu.pipeline_mode<synchronous>, transform_indices = @transform_27, window_bounds = array<i64: 1, 32>}, {transform_indices = @transform_28, window_bounds = array<i64: 1, 8, 32>}]} {
    %c0 = arith.constant 0 : index
    %c0_0 = arith.constant 0 : index
    %c0_1 = arith.constant 0 : index
    %0 = vector.load %arg1[%c0, %c0_0, %c0_1] : memref<1x8x32xf32, #tpu.memory_space<vmem>>, vector<1x8x32xf32>
    %1 = vector.shape_cast %0 : vector<1x8x32xf32> to vector<8x32xf32>
    %c0_2 = arith.constant 0 : index
    %c0_3 = arith.constant 0 : index
    %c0_4 = arith.constant 0 : index
    %2 = vector.load %arg2[%c0_2, %c0_3, %c0_4] : memref<1x16x32xf32, #tpu.memory_space<vmem>>, vector<1x16x32xf32>
    %3 = vector.shape_cast %2 : vector<1x16x32xf32> to vector<16x32xf32>
    %c0_5 = arith.constant 0 : index
    %c0_6 = arith.constant 0 : index
    %4 = vector.load %arg3[%c0_5, %c0_6] : memref<32x32xf32, #tpu.memory_space<vmem>>, vector<32x32xf32>
    %c0_7 = arith.constant 0 : index
    %c0_8 = arith.constant 0 : index
    %5 = vector.load %arg4[%c0_7, %c0_8] : memref<32x32xf32, #tpu.memory_space<vmem>>, vector<32x32xf32>
    %c0_9 = arith.constant 0 : index
    %c0_10 = arith.constant 0 : index
    %6 = vector.load %arg5[%c0_9, %c0_10] : memref<32x32xf32, #tpu.memory_space<vmem>>, vector<32x32xf32>
    %c0_11 = arith.constant 0 : index
    %c0_12 = arith.constant 0 : index
    %7 = vector.load %arg6[%c0_11, %c0_12] : memref<1x32xf32, #tpu.memory_space<vmem>>, vector<1x32xf32>
    %c0_13 = arith.constant 0 : index
    %c0_14 = arith.constant 0 : index
    %8 = vector.load %arg7[%c0_13, %c0_14] : memref<1x32xf32, #tpu.memory_space<vmem>>, vector<1x32xf32>
    %c0_15 = arith.constant 0 : index
    %c0_16 = arith.constant 0 : index
    %9 = vector.load %arg8[%c0_15, %c0_16] : memref<1x32xf32, #tpu.memory_space<vmem>>, vector<1x32xf32>
    %c0_17 = arith.constant 0 : index
    %c0_18 = arith.constant 0 : index
    %10 = vector.load %arg9[%c0_17, %c0_18] : memref<32x32xf32, #tpu.memory_space<vmem>>, vector<32x32xf32>
    %c0_19 = arith.constant 0 : index
    %c0_20 = arith.constant 0 : index
    %11 = vector.load %arg10[%c0_19, %c0_20] : memref<1x32xf32, #tpu.memory_space<vmem>>, vector<1x32xf32>
    %cst = arith.constant dense<0.000000e+00> : vector<8x32xf32>
    %12 = tpu.matmul %1, %4, %cst {dimension_numbers = #tpu.dot_dimension_numbers<[1], [0], [0], [1], [0, 0, 1, 1], [], []>} : vector<8x32xf32>, vector<32x32xf32>, vector<8x32xf32> -> vector<8x32xf32>
    %13 = vector.broadcast %7 : vector<1x32xf32> to vector<8x32xf32>
    %14 = arith.addf %12, %13 : vector<8x32xf32>
    %cst_21 = arith.constant dense<0.000000e+00> : vector<8x32xf32>
    %15 = tpu.matmul %1, %5, %cst_21 {dimension_numbers = #tpu.dot_dimension_numbers<[1], [0], [0], [1], [0, 0, 1, 1], [], []>} : vector<8x32xf32>, vector<32x32xf32>, vector<8x32xf32> -> vector<8x32xf32>
    %16 = vector.broadcast %8 : vector<1x32xf32> to vector<8x32xf32>
    %17 = arith.addf %15, %16 : vector<8x32xf32>
    %cst_22 = arith.constant dense<0.000000e+00> : vector<8x32xf32>
    %18 = tpu.matmul %1, %6, %cst_22 {dimension_numbers = #tpu.dot_dimension_numbers<[1], [0], [0], [1], [0, 0, 1, 1], [], []>} : vector<8x32xf32>, vector<32x32xf32>, vector<8x32xf32> -> vector<8x32xf32>
    %19 = vector.broadcast %9 : vector<1x32xf32> to vector<8x32xf32>
    %20 = arith.addf %18, %19 : vector<8x32xf32>
    %21 = vector.extract_strided_slice %14 {offsets = [0, 0], sizes = [8, 8], strides = [1, 1]} : vector<8x32xf32> to vector<8x8xf32>
    %cst_23 = arith.constant 0.353553385 : f32
    %22 = vector.broadcast %cst_23 : f32 to vector<8x8xf32>
    %23 = arith.mulf %21, %22 : vector<8x8xf32>
    %24 = vector.extract_strided_slice %17 {offsets = [0, 0], sizes = [8, 8], strides = [1, 1]} : vector<8x32xf32> to vector<8x8xf32>
    %cst_24 = arith.constant dense<0.000000e+00> : vector<8x8xf32>
    %25 = tpu.matmul %23, %24, %cst_24 {dimension_numbers = #tpu.dot_dimension_numbers<[1], [1], [0], [0], [0, 0, 1, 0], [], []>} : vector<8x8xf32>, vector<8x8xf32>, vector<8x8xf32> -> vector<8x8xf32>
    %cst_25 = arith.constant dense<0xFF800000> : vector<8xf32>
    %26 = vector.multi_reduction <maximumf>, %25, %cst_25 [1] : vector<8x8xf32> to vector<8xf32>
    %27 = vector.shape_cast %26 : vector<8xf32> to vector<8x1xf32>
    %28 = vector.broadcast %27 : vector<8x1xf32> to vector<8x8xf32>
    %29 = arith.subf %25, %28 : vector<8x8xf32>
    %30 = math.exp %29 : vector<8x8xf32>
    %cst_26 = arith.constant dense<0.000000e+00> : vector<8xf32>
    %31 = vector.multi_reduction <add>, %30, %cst_26 [1] : vector<8x8xf32> to vector<8xf32>
    %32 = vector.shape_cast %31 : vector<8xf32> to vector<8x1xf32>
    %33 = tpu.reciprocal %32 {approx = true} : vector<8x1xf32> -> vector<8x1xf32>
    %34 = vector.broadcast %33 : vector<8x1xf32> to vector<8x8xf32>
    %35 = arith.mulf %30, %34 : vector<8x8xf32>
    %36 = vector.extract_strided_slice %20 {offsets = [0, 0], sizes = [8, 8], strides = [1, 1]} : vector<8x32xf32> to vector<8x8xf32>
    %cst_27 = arith.constant dense<0.000000e+00> : vector<8x8xf32>
    %37 = tpu.matmul %35, %36, %cst_27 {dimension_numbers = #tpu.dot_dimension_numbers<[1], [0], [0], [1], [0, 0, 1, 1], [], []>} : vector<8x8xf32>, vector<8x8xf32>, vector<8x8xf32> -> vector<8x8xf32>
    %38 = vector.extract_strided_slice %14 {offsets = [0, 8], sizes = [8, 8], strides = [1, 1]} : vector<8x32xf32> to vector<8x8xf32>
    %cst_28 = arith.constant 0.353553385 : f32
    %39 = vector.broadcast %cst_28 : f32 to vector<8x8xf32>
    %40 = arith.mulf %38, %39 : vector<8x8xf32>
    %41 = vector.extract_strided_slice %17 {offsets = [0, 8], sizes = [8, 8], strides = [1, 1]} : vector<8x32xf32> to vector<8x8xf32>
    %cst_29 = arith.constant dense<0.000000e+00> : vector<8x8xf32>
    %42 = tpu.matmul %40, %41, %cst_29 {dimension_numbers = #tpu.dot_dimension_numbers<[1], [1], [0], [0], [0, 0, 1, 0], [], []>} : vector<8x8xf32>, vector<8x8xf32>, vector<8x8xf32> -> vector<8x8xf32>
    %cst_30 = arith.constant dense<0xFF800000> : vector<8xf32>
    %43 = vector.multi_reduction <maximumf>, %42, %cst_30 [1] : vector<8x8xf32> to vector<8xf32>
    %44 = vector.shape_cast %43 : vector<8xf32> to vector<8x1xf32>
    %45 = vector.broadcast %44 : vector<8x1xf32> to vector<8x8xf32>
    %46 = arith.subf %42, %45 : vector<8x8xf32>
    %47 = math.exp %46 : vector<8x8xf32>
    %cst_31 = arith.constant dense<0.000000e+00> : vector<8xf32>
    %48 = vector.multi_reduction <add>, %47, %cst_31 [1] : vector<8x8xf32> to vector<8xf32>
    %49 = vector.shape_cast %48 : vector<8xf32> to vector<8x1xf32>
    %50 = tpu.reciprocal %49 {approx = true} : vector<8x1xf32> -> vector<8x1xf32>
    %51 = vector.broadcast %50 : vector<8x1xf32> to vector<8x8xf32>
    %52 = arith.mulf %47, %51 : vector<8x8xf32>
    %53 = vector.extract_strided_slice %20 {offsets = [0, 8], sizes = [8, 8], strides = [1, 1]} : vector<8x32xf32> to vector<8x8xf32>
    %cst_32 = arith.constant dense<0.000000e+00> : vector<8x8xf32>
    %54 = tpu.matmul %52, %53, %cst_32 {dimension_numbers = #tpu.dot_dimension_numbers<[1], [0], [0], [1], [0, 0, 1, 1], [], []>} : vector<8x8xf32>, vector<8x8xf32>, vector<8x8xf32> -> vector<8x8xf32>
    %55 = vector.extract_strided_slice %14 {offsets = [0, 16], sizes = [8, 8], strides = [1, 1]} : vector<8x32xf32> to vector<8x8xf32>
    %cst_33 = arith.constant 0.353553385 : f32
    %56 = vector.broadcast %cst_33 : f32 to vector<8x8xf32>
    %57 = arith.mulf %55, %56 : vector<8x8xf32>
    %58 = vector.extract_strided_slice %17 {offsets = [0, 16], sizes = [8, 8], strides = [1, 1]} : vector<8x32xf32> to vector<8x8xf32>
    %cst_34 = arith.constant dense<0.000000e+00> : vector<8x8xf32>
    %59 = tpu.matmul %57, %58, %cst_34 {dimension_numbers = #tpu.dot_dimension_numbers<[1], [1], [0], [0], [0, 0, 1, 0], [], []>} : vector<8x8xf32>, vector<8x8xf32>, vector<8x8xf32> -> vector<8x8xf32>
    %cst_35 = arith.constant dense<0xFF800000> : vector<8xf32>
    %60 = vector.multi_reduction <maximumf>, %59, %cst_35 [1] : vector<8x8xf32> to vector<8xf32>
    %61 = vector.shape_cast %60 : vector<8xf32> to vector<8x1xf32>
    %62 = vector.broadcast %61 : vector<8x1xf32> to vector<8x8xf32>
    %63 = arith.subf %59, %62 : vector<8x8xf32>
    %64 = math.exp %63 : vector<8x8xf32>
    %cst_36 = arith.constant dense<0.000000e+00> : vector<8xf32>
    %65 = vector.multi_reduction <add>, %64, %cst_36 [1] : vector<8x8xf32> to vector<8xf32>
    %66 = vector.shape_cast %65 : vector<8xf32> to vector<8x1xf32>
    %67 = tpu.reciprocal %66 {approx = true} : vector<8x1xf32> -> vector<8x1xf32>
    %68 = vector.broadcast %67 : vector<8x1xf32> to vector<8x8xf32>
    %69 = arith.mulf %64, %68 : vector<8x8xf32>
    %70 = vector.extract_strided_slice %20 {offsets = [0, 16], sizes = [8, 8], strides = [1, 1]} : vector<8x32xf32> to vector<8x8xf32>
    %cst_37 = arith.constant dense<0.000000e+00> : vector<8x8xf32>
    %71 = tpu.matmul %69, %70, %cst_37 {dimension_numbers = #tpu.dot_dimension_numbers<[1], [0], [0], [1], [0, 0, 1, 1], [], []>} : vector<8x8xf32>, vector<8x8xf32>, vector<8x8xf32> -> vector<8x8xf32>
    %72 = vector.extract_strided_slice %14 {offsets = [0, 24], sizes = [8, 8], strides = [1, 1]} : vector<8x32xf32> to vector<8x8xf32>
    %cst_38 = arith.constant 0.353553385 : f32
    %73 = vector.broadcast %cst_38 : f32 to vector<8x8xf32>
    %74 = arith.mulf %72, %73 : vector<8x8xf32>
    %75 = vector.extract_strided_slice %17 {offsets = [0, 24], sizes = [8, 8], strides = [1, 1]} : vector<8x32xf32> to vector<8x8xf32>
    %cst_39 = arith.constant dense<0.000000e+00> : vector<8x8xf32>
    %76 = tpu.matmul %74, %75, %cst_39 {dimension_numbers = #tpu.dot_dimension_numbers<[1], [1], [0], [0], [0, 0, 1, 0], [], []>} : vector<8x8xf32>, vector<8x8xf32>, vector<8x8xf32> -> vector<8x8xf32>
    %cst_40 = arith.constant dense<0xFF800000> : vector<8xf32>
    %77 = vector.multi_reduction <maximumf>, %76, %cst_40 [1] : vector<8x8xf32> to vector<8xf32>
    %78 = vector.shape_cast %77 : vector<8xf32> to vector<8x1xf32>
    %79 = vector.broadcast %78 : vector<8x1xf32> to vector<8x8xf32>
    %80 = arith.subf %76, %79 : vector<8x8xf32>
    %81 = math.exp %80 : vector<8x8xf32>
    %cst_41 = arith.constant dense<0.000000e+00> : vector<8xf32>
    %82 = vector.multi_reduction <add>, %81, %cst_41 [1] : vector<8x8xf32> to vector<8xf32>
    %83 = vector.shape_cast %82 : vector<8xf32> to vector<8x1xf32>
    %84 = tpu.reciprocal %83 {approx = true} : vector<8x1xf32> -> vector<8x1xf32>
    %85 = vector.broadcast %84 : vector<8x1xf32> to vector<8x8xf32>
    %86 = arith.mulf %81, %85 : vector<8x8xf32>
    %87 = vector.extract_strided_slice %20 {offsets = [0, 24], sizes = [8, 8], strides = [1, 1]} : vector<8x32xf32> to vector<8x8xf32>
    %cst_42 = arith.constant dense<0.000000e+00> : vector<8x8xf32>
    %88 = tpu.matmul %86, %87, %cst_42 {dimension_numbers = #tpu.dot_dimension_numbers<[1], [0], [0], [1], [0, 0, 1, 1], [], []>} : vector<8x8xf32>, vector<8x8xf32>, vector<8x8xf32> -> vector<8x8xf32>
    %89 = tpu.concatenate %37, %54, %71, %88 in 1 : vector<8x8xf32>, vector<8x8xf32>, vector<8x8xf32>, vector<8x8xf32> -> vector<8x32xf32>
    %cst_43 = arith.constant dense<0.000000e+00> : vector<8x32xf32>
    %90 = tpu.matmul %89, %10, %cst_43 {dimension_numbers = #tpu.dot_dimension_numbers<[1], [0], [0], [1], [0, 0, 1, 1], [], []>} : vector<8x32xf32>, vector<32x32xf32>, vector<8x32xf32> -> vector<8x32xf32>
    %91 = vector.broadcast %11 : vector<1x32xf32> to vector<8x32xf32>
    %92 = arith.addf %90, %91 : vector<8x32xf32>
    %c0_44 = arith.constant 0 : index
    %c0_45 = arith.constant 0 : index
    %93 = vector.load %arg23[%c0_44, %c0_45] : memref<1x32xf32, #tpu.memory_space<vmem>>, vector<1x32xf32>
    %c0_46 = arith.constant 0 : index
    %c0_47 = arith.constant 0 : index
    %94 = vector.load %arg24[%c0_46, %c0_47] : memref<1x32xf32, #tpu.memory_space<vmem>>, vector<1x32xf32>
    %95 = arith.addf %1, %92 : vector<8x32xf32>
    %cst_48 = arith.constant dense<0.000000e+00> : vector<8xf32>
    %96 = vector.multi_reduction <add>, %95, %cst_48 [1] : vector<8x32xf32> to vector<8xf32>
    %97 = vector.shape_cast %96 : vector<8xf32> to vector<8x1xf32>
    %cst_49 = arith.constant 3.200000e+01 : f32
    %98 = vector.broadcast %cst_49 : f32 to vector<8x1xf32>
    %99 = arith.divf %97, %98 : vector<8x1xf32>
    %100 = vector.broadcast %99 : vector<8x1xf32> to vector<8x32xf32>
    %101 = arith.subf %95, %100 : vector<8x32xf32>
    %102 = arith.mulf %101, %101 : vector<8x32xf32>
    %cst_50 = arith.constant dense<0.000000e+00> : vector<8xf32>
    %103 = vector.multi_reduction <add>, %102, %cst_50 [1] : vector<8x32xf32> to vector<8xf32>
    %104 = vector.shape_cast %103 : vector<8xf32> to vector<8x1xf32>
    %cst_51 = arith.constant 3.200000e+01 : f32
    %105 = vector.broadcast %cst_51 : f32 to vector<8x1xf32>
    %106 = arith.divf %104, %105 : vector<8x1xf32>
    %cst_52 = arith.constant 9.99999974E-6 : f32
    %107 = vector.broadcast %cst_52 : f32 to vector<8x1xf32>
    %108 = arith.addf %106, %107 : vector<8x1xf32>
    %109 = math.rsqrt %108 : vector<8x1xf32>
    %110 = vector.broadcast %109 : vector<8x1xf32> to vector<8x32xf32>
    %111 = arith.mulf %101, %110 : vector<8x32xf32>
    %112 = vector.broadcast %93 : vector<1x32xf32> to vector<8x32xf32>
    %113 = arith.mulf %111, %112 : vector<8x32xf32>
    %114 = vector.broadcast %94 : vector<1x32xf32> to vector<8x32xf32>
    %115 = arith.addf %113, %114 : vector<8x32xf32>
    %c0_53 = arith.constant 0 : index
    %c0_54 = arith.constant 0 : index
    %116 = vector.load %arg11[%c0_53, %c0_54] : memref<32x32xf32, #tpu.memory_space<vmem>>, vector<32x32xf32>
    %c0_55 = arith.constant 0 : index
    %c0_56 = arith.constant 0 : index
    %117 = vector.load %arg12[%c0_55, %c0_56] : memref<32x32xf32, #tpu.memory_space<vmem>>, vector<32x32xf32>
    %c0_57 = arith.constant 0 : index
    %c0_58 = arith.constant 0 : index
    %118 = vector.load %arg13[%c0_57, %c0_58] : memref<32x32xf32, #tpu.memory_space<vmem>>, vector<32x32xf32>
    %c0_59 = arith.constant 0 : index
    %c0_60 = arith.constant 0 : index
    %119 = vector.load %arg14[%c0_59, %c0_60] : memref<1x32xf32, #tpu.memory_space<vmem>>, vector<1x32xf32>
    %c0_61 = arith.constant 0 : index
    %c0_62 = arith.constant 0 : index
    %120 = vector.load %arg15[%c0_61, %c0_62] : memref<1x32xf32, #tpu.memory_space<vmem>>, vector<1x32xf32>
    %c0_63 = arith.constant 0 : index
    %c0_64 = arith.constant 0 : index
    %121 = vector.load %arg16[%c0_63, %c0_64] : memref<1x32xf32, #tpu.memory_space<vmem>>, vector<1x32xf32>
    %c0_65 = arith.constant 0 : index
    %c0_66 = arith.constant 0 : index
    %122 = vector.load %arg17[%c0_65, %c0_66] : memref<32x32xf32, #tpu.memory_space<vmem>>, vector<32x32xf32>
    %c0_67 = arith.constant 0 : index
    %c0_68 = arith.constant 0 : index
    %123 = vector.load %arg18[%c0_67, %c0_68] : memref<1x32xf32, #tpu.memory_space<vmem>>, vector<1x32xf32>
    %cst_69 = arith.constant dense<0.000000e+00> : vector<8x32xf32>
    %124 = tpu.matmul %115, %116, %cst_69 {dimension_numbers = #tpu.dot_dimension_numbers<[1], [0], [0], [1], [0, 0, 1, 1], [], []>} : vector<8x32xf32>, vector<32x32xf32>, vector<8x32xf32> -> vector<8x32xf32>
    %125 = vector.broadcast %119 : vector<1x32xf32> to vector<8x32xf32>
    %126 = arith.addf %124, %125 : vector<8x32xf32>
    %cst_70 = arith.constant dense<0.000000e+00> : vector<16x32xf32>
    %127 = tpu.matmul %3, %117, %cst_70 {dimension_numbers = #tpu.dot_dimension_numbers<[1], [0], [0], [1], [0, 0, 1, 1], [], []>} : vector<16x32xf32>, vector<32x32xf32>, vector<16x32xf32> -> vector<16x32xf32>
    %128 = vector.broadcast %120 : vector<1x32xf32> to vector<16x32xf32>
    %129 = arith.addf %127, %128 : vector<16x32xf32>
    %cst_71 = arith.constant dense<0.000000e+00> : vector<16x32xf32>
    %130 = tpu.matmul %3, %118, %cst_71 {dimension_numbers = #tpu.dot_dimension_numbers<[1], [0], [0], [1], [0, 0, 1, 1], [], []>} : vector<16x32xf32>, vector<32x32xf32>, vector<16x32xf32> -> vector<16x32xf32>
    %131 = vector.broadcast %121 : vector<1x32xf32> to vector<16x32xf32>
    %132 = arith.addf %130, %131 : vector<16x32xf32>
    %133 = vector.extract_strided_slice %126 {offsets = [0, 0], sizes = [8, 8], strides = [1, 1]} : vector<8x32xf32> to vector<8x8xf32>
    %cst_72 = arith.constant 0.353553385 : f32
    %134 = vector.broadcast %cst_72 : f32 to vector<8x8xf32>
    %135 = arith.mulf %133, %134 : vector<8x8xf32>
    %136 = vector.extract_strided_slice %129 {offsets = [0, 0], sizes = [16, 8], strides = [1, 1]} : vector<16x32xf32> to vector<16x8xf32>
    %cst_73 = arith.constant dense<0.000000e+00> : vector<8x16xf32>
    %137 = tpu.matmul %135, %136, %cst_73 {dimension_numbers = #tpu.dot_dimension_numbers<[1], [1], [0], [0], [0, 0, 1, 0], [], []>} : vector<8x8xf32>, vector<16x8xf32>, vector<8x16xf32> -> vector<8x16xf32>
    %cst_74 = arith.constant dense<0xFF800000> : vector<8xf32>
    %138 = vector.multi_reduction <maximumf>, %137, %cst_74 [1] : vector<8x16xf32> to vector<8xf32>
    %139 = vector.shape_cast %138 : vector<8xf32> to vector<8x1xf32>
    %140 = vector.broadcast %139 : vector<8x1xf32> to vector<8x16xf32>
    %141 = arith.subf %137, %140 : vector<8x16xf32>
    %142 = math.exp %141 : vector<8x16xf32>
    %cst_75 = arith.constant dense<0.000000e+00> : vector<8xf32>
    %143 = vector.multi_reduction <add>, %142, %cst_75 [1] : vector<8x16xf32> to vector<8xf32>
    %144 = vector.shape_cast %143 : vector<8xf32> to vector<8x1xf32>
    %145 = tpu.reciprocal %144 {approx = true} : vector<8x1xf32> -> vector<8x1xf32>
    %146 = vector.broadcast %145 : vector<8x1xf32> to vector<8x16xf32>
    %147 = arith.mulf %142, %146 : vector<8x16xf32>
    %148 = vector.extract_strided_slice %132 {offsets = [0, 0], sizes = [16, 8], strides = [1, 1]} : vector<16x32xf32> to vector<16x8xf32>
    %cst_76 = arith.constant dense<0.000000e+00> : vector<8x8xf32>
    %149 = tpu.matmul %147, %148, %cst_76 {dimension_numbers = #tpu.dot_dimension_numbers<[1], [0], [0], [1], [0, 0, 1, 1], [], []>} : vector<8x16xf32>, vector<16x8xf32>, vector<8x8xf32> -> vector<8x8xf32>
    %150 = vector.extract_strided_slice %126 {offsets = [0, 8], sizes = [8, 8], strides = [1, 1]} : vector<8x32xf32> to vector<8x8xf32>
    %cst_77 = arith.constant 0.353553385 : f32
    %151 = vector.broadcast %cst_77 : f32 to vector<8x8xf32>
    %152 = arith.mulf %150, %151 : vector<8x8xf32>
    %153 = vector.extract_strided_slice %129 {offsets = [0, 8], sizes = [16, 8], strides = [1, 1]} : vector<16x32xf32> to vector<16x8xf32>
    %cst_78 = arith.constant dense<0.000000e+00> : vector<8x16xf32>
    %154 = tpu.matmul %152, %153, %cst_78 {dimension_numbers = #tpu.dot_dimension_numbers<[1], [1], [0], [0], [0, 0, 1, 0], [], []>} : vector<8x8xf32>, vector<16x8xf32>, vector<8x16xf32> -> vector<8x16xf32>
    %cst_79 = arith.constant dense<0xFF800000> : vector<8xf32>
    %155 = vector.multi_reduction <maximumf>, %154, %cst_79 [1] : vector<8x16xf32> to vector<8xf32>
    %156 = vector.shape_cast %155 : vector<8xf32> to vector<8x1xf32>
    %157 = vector.broadcast %156 : vector<8x1xf32> to vector<8x16xf32>
    %158 = arith.subf %154, %157 : vector<8x16xf32>
    %159 = math.exp %158 : vector<8x16xf32>
    %cst_80 = arith.constant dense<0.000000e+00> : vector<8xf32>
    %160 = vector.multi_reduction <add>, %159, %cst_80 [1] : vector<8x16xf32> to vector<8xf32>
    %161 = vector.shape_cast %160 : vector<8xf32> to vector<8x1xf32>
    %162 = tpu.reciprocal %161 {approx = true} : vector<8x1xf32> -> vector<8x1xf32>
    %163 = vector.broadcast %162 : vector<8x1xf32> to vector<8x16xf32>
    %164 = arith.mulf %159, %163 : vector<8x16xf32>
    %165 = vector.extract_strided_slice %132 {offsets = [0, 8], sizes = [16, 8], strides = [1, 1]} : vector<16x32xf32> to vector<16x8xf32>
    %cst_81 = arith.constant dense<0.000000e+00> : vector<8x8xf32>
    %166 = tpu.matmul %164, %165, %cst_81 {dimension_numbers = #tpu.dot_dimension_numbers<[1], [0], [0], [1], [0, 0, 1, 1], [], []>} : vector<8x16xf32>, vector<16x8xf32>, vector<8x8xf32> -> vector<8x8xf32>
    %167 = vector.extract_strided_slice %126 {offsets = [0, 16], sizes = [8, 8], strides = [1, 1]} : vector<8x32xf32> to vector<8x8xf32>
    %cst_82 = arith.constant 0.353553385 : f32
    %168 = vector.broadcast %cst_82 : f32 to vector<8x8xf32>
    %169 = arith.mulf %167, %168 : vector<8x8xf32>
    %170 = vector.extract_strided_slice %129 {offsets = [0, 16], sizes = [16, 8], strides = [1, 1]} : vector<16x32xf32> to vector<16x8xf32>
    %cst_83 = arith.constant dense<0.000000e+00> : vector<8x16xf32>
    %171 = tpu.matmul %169, %170, %cst_83 {dimension_numbers = #tpu.dot_dimension_numbers<[1], [1], [0], [0], [0, 0, 1, 0], [], []>} : vector<8x8xf32>, vector<16x8xf32>, vector<8x16xf32> -> vector<8x16xf32>
    %cst_84 = arith.constant dense<0xFF800000> : vector<8xf32>
    %172 = vector.multi_reduction <maximumf>, %171, %cst_84 [1] : vector<8x16xf32> to vector<8xf32>
    %173 = vector.shape_cast %172 : vector<8xf32> to vector<8x1xf32>
    %174 = vector.broadcast %173 : vector<8x1xf32> to vector<8x16xf32>
    %175 = arith.subf %171, %174 : vector<8x16xf32>
    %176 = math.exp %175 : vector<8x16xf32>
    %cst_85 = arith.constant dense<0.000000e+00> : vector<8xf32>
    %177 = vector.multi_reduction <add>, %176, %cst_85 [1] : vector<8x16xf32> to vector<8xf32>
    %178 = vector.shape_cast %177 : vector<8xf32> to vector<8x1xf32>
    %179 = tpu.reciprocal %178 {approx = true} : vector<8x1xf32> -> vector<8x1xf32>
    %180 = vector.broadcast %179 : vector<8x1xf32> to vector<8x16xf32>
    %181 = arith.mulf %176, %180 : vector<8x16xf32>
    %182 = vector.extract_strided_slice %132 {offsets = [0, 16], sizes = [16, 8], strides = [1, 1]} : vector<16x32xf32> to vector<16x8xf32>
    %cst_86 = arith.constant dense<0.000000e+00> : vector<8x8xf32>
    %183 = tpu.matmul %181, %182, %cst_86 {dimension_numbers = #tpu.dot_dimension_numbers<[1], [0], [0], [1], [0, 0, 1, 1], [], []>} : vector<8x16xf32>, vector<16x8xf32>, vector<8x8xf32> -> vector<8x8xf32>
    %184 = vector.extract_strided_slice %126 {offsets = [0, 24], sizes = [8, 8], strides = [1, 1]} : vector<8x32xf32> to vector<8x8xf32>
    %cst_87 = arith.constant 0.353553385 : f32
    %185 = vector.broadcast %cst_87 : f32 to vector<8x8xf32>
    %186 = arith.mulf %184, %185 : vector<8x8xf32>
    %187 = vector.extract_strided_slice %129 {offsets = [0, 24], sizes = [16, 8], strides = [1, 1]} : vector<16x32xf32> to vector<16x8xf32>
    %cst_88 = arith.constant dense<0.000000e+00> : vector<8x16xf32>
    %188 = tpu.matmul %186, %187, %cst_88 {dimension_numbers = #tpu.dot_dimension_numbers<[1], [1], [0], [0], [0, 0, 1, 0], [], []>} : vector<8x8xf32>, vector<16x8xf32>, vector<8x16xf32> -> vector<8x16xf32>
    %cst_89 = arith.constant dense<0xFF800000> : vector<8xf32>
    %189 = vector.multi_reduction <maximumf>, %188, %cst_89 [1] : vector<8x16xf32> to vector<8xf32>
    %190 = vector.shape_cast %189 : vector<8xf32> to vector<8x1xf32>
    %191 = vector.broadcast %190 : vector<8x1xf32> to vector<8x16xf32>
    %192 = arith.subf %188, %191 : vector<8x16xf32>
    %193 = math.exp %192 : vector<8x16xf32>
    %cst_90 = arith.constant dense<0.000000e+00> : vector<8xf32>
    %194 = vector.multi_reduction <add>, %193, %cst_90 [1] : vector<8x16xf32> to vector<8xf32>
    %195 = vector.shape_cast %194 : vector<8xf32> to vector<8x1xf32>
    %196 = tpu.reciprocal %195 {approx = true} : vector<8x1xf32> -> vector<8x1xf32>
    %197 = vector.broadcast %196 : vector<8x1xf32> to vector<8x16xf32>
    %198 = arith.mulf %193, %197 : vector<8x16xf32>
    %199 = vector.extract_strided_slice %132 {offsets = [0, 24], sizes = [16, 8], strides = [1, 1]} : vector<16x32xf32> to vector<16x8xf32>
    %cst_91 = arith.constant dense<0.000000e+00> : vector<8x8xf32>
    %200 = tpu.matmul %198, %199, %cst_91 {dimension_numbers = #tpu.dot_dimension_numbers<[1], [0], [0], [1], [0, 0, 1, 1], [], []>} : vector<8x16xf32>, vector<16x8xf32>, vector<8x8xf32> -> vector<8x8xf32>
    %201 = tpu.concatenate %149, %166, %183, %200 in 1 : vector<8x8xf32>, vector<8x8xf32>, vector<8x8xf32>, vector<8x8xf32> -> vector<8x32xf32>
    %cst_92 = arith.constant dense<0.000000e+00> : vector<8x32xf32>
    %202 = tpu.matmul %201, %122, %cst_92 {dimension_numbers = #tpu.dot_dimension_numbers<[1], [0], [0], [1], [0, 0, 1, 1], [], []>} : vector<8x32xf32>, vector<32x32xf32>, vector<8x32xf32> -> vector<8x32xf32>
    %203 = vector.broadcast %123 : vector<1x32xf32> to vector<8x32xf32>
    %204 = arith.addf %202, %203 : vector<8x32xf32>
    %c0_93 = arith.constant 0 : index
    %c0_94 = arith.constant 0 : index
    %205 = vector.load %arg25[%c0_93, %c0_94] : memref<1x32xf32, #tpu.memory_space<vmem>>, vector<1x32xf32>
    %c0_95 = arith.constant 0 : index
    %c0_96 = arith.constant 0 : index
    %206 = vector.load %arg26[%c0_95, %c0_96] : memref<1x32xf32, #tpu.memory_space<vmem>>, vector<1x32xf32>
    %207 = arith.addf %115, %204 : vector<8x32xf32>
    %cst_97 = arith.constant dense<0.000000e+00> : vector<8xf32>
    %208 = vector.multi_reduction <add>, %207, %cst_97 [1] : vector<8x32xf32> to vector<8xf32>
    %209 = vector.shape_cast %208 : vector<8xf32> to vector<8x1xf32>
    %cst_98 = arith.constant 3.200000e+01 : f32
    %210 = vector.broadcast %cst_98 : f32 to vector<8x1xf32>
    %211 = arith.divf %209, %210 : vector<8x1xf32>
    %212 = vector.broadcast %211 : vector<8x1xf32> to vector<8x32xf32>
    %213 = arith.subf %207, %212 : vector<8x32xf32>
    %214 = arith.mulf %213, %213 : vector<8x32xf32>
    %cst_99 = arith.constant dense<0.000000e+00> : vector<8xf32>
    %215 = vector.multi_reduction <add>, %214, %cst_99 [1] : vector<8x32xf32> to vector<8xf32>
    %216 = vector.shape_cast %215 : vector<8xf32> to vector<8x1xf32>
    %cst_100 = arith.constant 3.200000e+01 : f32
    %217 = vector.broadcast %cst_100 : f32 to vector<8x1xf32>
    %218 = arith.divf %216, %217 : vector<8x1xf32>
    %cst_101 = arith.constant 9.99999974E-6 : f32
    %219 = vector.broadcast %cst_101 : f32 to vector<8x1xf32>
    %220 = arith.addf %218, %219 : vector<8x1xf32>
    %221 = math.rsqrt %220 : vector<8x1xf32>
    %222 = vector.broadcast %221 : vector<8x1xf32> to vector<8x32xf32>
    %223 = arith.mulf %213, %222 : vector<8x32xf32>
    %224 = vector.broadcast %205 : vector<1x32xf32> to vector<8x32xf32>
    %225 = arith.mulf %223, %224 : vector<8x32xf32>
    %226 = vector.broadcast %206 : vector<1x32xf32> to vector<8x32xf32>
    %227 = arith.addf %225, %226 : vector<8x32xf32>
    %c0_102 = arith.constant 0 : index
    %c0_103 = arith.constant 0 : index
    %228 = vector.load %arg19[%c0_102, %c0_103] : memref<32x64xf32, #tpu.memory_space<vmem>>, vector<32x64xf32>
    %cst_104 = arith.constant dense<0.000000e+00> : vector<8x64xf32>
    %229 = tpu.matmul %227, %228, %cst_104 {dimension_numbers = #tpu.dot_dimension_numbers<[1], [0], [0], [1], [0, 0, 1, 1], [], []>} : vector<8x32xf32>, vector<32x64xf32>, vector<8x64xf32> -> vector<8x64xf32>
    %c0_105 = arith.constant 0 : index
    %c0_106 = arith.constant 0 : index
    %230 = vector.load %arg20[%c0_105, %c0_106] : memref<1x64xf32, #tpu.memory_space<vmem>>, vector<1x64xf32>
    %231 = vector.broadcast %230 : vector<1x64xf32> to vector<8x64xf32>
    %232 = arith.addf %229, %231 : vector<8x64xf32>
    %cst_107 = arith.constant 0.000000e+00 : f32
    %233 = vector.broadcast %cst_107 : f32 to vector<8x64xf32>
    %234 = arith.maximumf %232, %233 : vector<8x64xf32>
    %c0_108 = arith.constant 0 : index
    %c0_109 = arith.constant 0 : index
    %235 = vector.load %arg21[%c0_108, %c0_109] : memref<64x32xf32, #tpu.memory_space<vmem>>, vector<64x32xf32>
    %cst_110 = arith.constant dense<0.000000e+00> : vector<8x32xf32>
    %236 = tpu.matmul %234, %235, %cst_110 {dimension_numbers = #tpu.dot_dimension_numbers<[1], [0], [0], [1], [0, 0, 1, 1], [], []>} : vector<8x64xf32>, vector<64x32xf32>, vector<8x32xf32> -> vector<8x32xf32>
    %c0_111 = arith.constant 0 : index
    %c0_112 = arith.constant 0 : index
    %237 = vector.load %arg22[%c0_111, %c0_112] : memref<1x32xf32, #tpu.memory_space<vmem>>, vector<1x32xf32>
    %238 = vector.broadcast %237 : vector<1x32xf32> to vector<8x32xf32>
    %239 = arith.addf %236, %238 : vector<8x32xf32>
    %c0_113 = arith.constant 0 : index
    %c0_114 = arith.constant 0 : index
    %240 = vector.load %arg27[%c0_113, %c0_114] : memref<1x32xf32, #tpu.memory_space<vmem>>, vector<1x32xf32>
    %c0_115 = arith.constant 0 : index
    %c0_116 = arith.constant 0 : index
    %241 = vector.load %arg28[%c0_115, %c0_116] : memref<1x32xf32, #tpu.memory_space<vmem>>, vector<1x32xf32>
    %242 = arith.addf %227, %239 : vector<8x32xf32>
    %cst_117 = arith.constant dense<0.000000e+00> : vector<8xf32>
    %243 = vector.multi_reduction <add>, %242, %cst_117 [1] : vector<8x32xf32> to vector<8xf32>
    %244 = vector.shape_cast %243 : vector<8xf32> to vector<8x1xf32>
    %cst_118 = arith.constant 3.200000e+01 : f32
    %245 = vector.broadcast %cst_118 : f32 to vector<8x1xf32>
    %246 = arith.divf %244, %245 : vector<8x1xf32>
    %247 = vector.broadcast %246 : vector<8x1xf32> to vector<8x32xf32>
    %248 = arith.subf %242, %247 : vector<8x32xf32>
    %249 = arith.mulf %248, %248 : vector<8x32xf32>
    %cst_119 = arith.constant dense<0.000000e+00> : vector<8xf32>
    %250 = vector.multi_reduction <add>, %249, %cst_119 [1] : vector<8x32xf32> to vector<8xf32>
    %251 = vector.shape_cast %250 : vector<8xf32> to vector<8x1xf32>
    %cst_120 = arith.constant 3.200000e+01 : f32
    %252 = vector.broadcast %cst_120 : f32 to vector<8x1xf32>
    %253 = arith.divf %251, %252 : vector<8x1xf32>
    %cst_121 = arith.constant 9.99999974E-6 : f32
    %254 = vector.broadcast %cst_121 : f32 to vector<8x1xf32>
    %255 = arith.addf %253, %254 : vector<8x1xf32>
    %256 = math.rsqrt %255 : vector<8x1xf32>
    %257 = vector.broadcast %256 : vector<8x1xf32> to vector<8x32xf32>
    %258 = arith.mulf %248, %257 : vector<8x32xf32>
    %259 = vector.broadcast %240 : vector<1x32xf32> to vector<8x32xf32>
    %260 = arith.mulf %258, %259 : vector<8x32xf32>
    %261 = vector.broadcast %241 : vector<1x32xf32> to vector<8x32xf32>
    %262 = arith.addf %260, %261 : vector<8x32xf32>
    %c0_122 = arith.constant 0 : index
    %c0_123 = arith.constant 0 : index
    %c0_124 = arith.constant 0 : index
    %263 = vector.load %arg29[%c0_122, %c0_123, %c0_124] : memref<1x8x32xf32, #tpu.memory_space<vmem>>, vector<1x8x32xf32>
    %264 = vector.shape_cast %263 : vector<1x8x32xf32> to vector<8x32xf32>
    %265 = vector.shape_cast %262 : vector<8x32xf32> to vector<1x8x32xf32>
    tpu.vector_store %arg29[%c0_122, %c0_123, %c0_124], %265 {strides = array<i32>} : memref<1x8x32xf32, #tpu.memory_space<vmem>>, vector<1x8x32xf32>,
    return
  }
  func.func @transform_0(%arg0: i32) -> (i32, i32, i32) {
    %c0_i32 = arith.constant 0 : i32
    %c0_i32_0 = arith.constant 0 : i32
    %c0_i32_1 = arith.constant 0 : i32
    return %arg0, %c0_i32, %c0_i32_0 : i32, i32, i32
  }
  func.func @transform_1(%arg0: i32) -> (i32, i32, i32) {
    %c0_i32 = arith.constant 0 : i32
    %c0_i32_0 = arith.constant 0 : i32
    %c0_i32_1 = arith.constant 0 : i32
    return %arg0, %c0_i32, %c0_i32_0 : i32, i32, i32
  }
  func.func @transform_2(%arg0: i32) -> (i32, i32) {
    %c0_i32 = arith.constant 0 : i32
    %c0_i32_0 = arith.constant 0 : i32
    %c0_i32_1 = arith.constant 0 : i32
    return %c0_i32, %c0_i32_0 : i32, i32
  }
  func.func @transform_3(%arg0: i32) -> (i32, i32) {
    %c0_i32 = arith.constant 0 : i32
    %c0_i32_0 = arith.constant 0 : i32
    %c0_i32_1 = arith.constant 0 : i32
    return %c0_i32, %c0_i32_0 : i32, i32
  }
  func.func @transform_4(%arg0: i32) -> (i32, i32) {
    %c0_i32 = arith.constant 0 : i32
    %c0_i32_0 = arith.constant 0 : i32
    %c0_i32_1 = arith.constant 0 : i32
    return %c0_i32, %c0_i32_0 : i32, i32
  }
  func.func @transform_5(%arg0: i32) -> (i32, i32) {
    %c0_i32 = arith.constant 0 : i32
    %c0_i32_0 = arith.constant 0 : i32
    %c0_i32_1 = arith.constant 0 : i32
    return %c0_i32, %c0_i32_0 : i32, i32
  }
  func.func @transform_6(%arg0: i32) -> (i32, i32) {
    %c0_i32 = arith.constant 0 : i32
    %c0_i32_0 = arith.constant 0 : i32
    %c0_i32_1 = arith.constant 0 : i32
    return %c0_i32, %c0_i32_0 : i32, i32
  }
  func.func @transform_7(%arg0: i32) -> (i32, i32) {
    %c0_i32 = arith.constant 0 : i32
    %c0_i32_0 = arith.constant 0 : i32
    %c0_i32_1 = arith.constant 0 : i32
    return %c0_i32, %c0_i32_0 : i32, i32
  }
  func.func @transform_8(%arg0: i32) -> (i32, i32) {
    %c0_i32 = arith.constant 0 : i32
    %c0_i32_0 = arith.constant 0 : i32
    %c0_i32_1 = arith.constant 0 : i32
    return %c0_i32, %c0_i32_0 : i32, i32
  }
  func.func @transform_9(%arg0: i32) -> (i32, i32) {
    %c0_i32 = arith.constant 0 : i32
    %c0_i32_0 = arith.constant 0 : i32
    %c0_i32_1 = arith.constant 0 : i32
    return %c0_i32, %c0_i32_0 : i32, i32
  }
  func.func @transform_10(%arg0: i32) -> (i32, i32) {
    %c0_i32 = arith.constant 0 : i32
    %c0_i32_0 = arith.constant 0 : i32
    %c0_i32_1 = arith.constant 0 : i32
    return %c0_i32, %c0_i32_0 : i32, i32
  }
  func.func @transform_11(%arg0: i32) -> (i32, i32) {
    %c0_i32 = arith.constant 0 : i32
    %c0_i32_0 = arith.constant 0 : i32
    %c0_i32_1 = arith.constant 0 : i32
    return %c0_i32, %c0_i32_0 : i32, i32
  }
  func.func @transform_12(%arg0: i32) -> (i32, i32) {
    %c0_i32 = arith.constant 0 : i32
    %c0_i32_0 = arith.constant 0 : i32
    %c0_i32_1 = arith.constant 0 : i32
    return %c0_i32, %c0_i32_0 : i32, i32
  }
  func.func @transform_13(%arg0: i32) -> (i32, i32) {
    %c0_i32 = arith.constant 0 : i32
    %c0_i32_0 = arith.constant 0 : i32
    %c0_i32_1 = arith.constant 0 : i32
    return %c0_i32, %c0_i32_0 : i32, i32
  }
  func.func @transform_14(%arg0: i32) -> (i32, i32) {
    %c0_i32 = arith.constant 0 : i32
    %c0_i32_0 = arith.constant 0 : i32
    %c0_i32_1 = arith.constant 0 : i32
    return %c0_i32, %c0_i32_0 : i32, i32
  }
  func.func @transform_15(%arg0: i32) -> (i32, i32) {
    %c0_i32 = arith.constant 0 : i32
    %c0_i32_0 = arith.constant 0 : i32
    %c0_i32_1 = arith.constant 0 : i32
    return %c0_i32, %c0_i32_0 : i32, i32
  }
  func.func @transform_16(%arg0: i32) -> (i32, i32) {
    %c0_i32 = arith.constant 0 : i32
    %c0_i32_0 = arith.constant 0 : i32
    %c0_i32_1 = arith.constant 0 : i32
    return %c0_i32, %c0_i32_0 : i32, i32
  }
  func.func @transform_17(%arg0: i32) -> (i32, i32) {
    %c0_i32 = arith.constant 0 : i32
    %c0_i32_0 = arith.constant 0 : i32
    %c0_i32_1 = arith.constant 0 : i32
    return %c0_i32, %c0_i32_0 : i32, i32
  }
  func.func @transform_18(%arg0: i32) -> (i32, i32) {
    %c0_i32 = arith.constant 0 : i32
    %c0_i32_0 = arith.constant 0 : i32
    %c0_i32_1 = arith.constant 0 : i32
    return %c0_i32, %c0_i32_0 : i32, i32
  }
  func.func @transform_19(%arg0: i32) -> (i32, i32) {
    %c0_i32 = arith.constant 0 : i32
    %c0_i32_0 = arith.constant 0 : i32
    %c0_i32_1 = arith.constant 0 : i32
    return %c0_i32, %c0_i32_0 : i32, i32
  }
  func.func @transform_20(%arg0: i32) -> (i32, i32) {
    %c0_i32 = arith.constant 0 : i32
    %c0_i32_0 = arith.constant 0 : i32
    %c0_i32_1 = arith.constant 0 : i32
    return %c0_i32, %c0_i32_0 : i32, i32
  }
  func.func @transform_21(%arg0: i32) -> (i32, i32) {
    %c0_i32 = arith.constant 0 : i32
    %c0_i32_0 = arith.constant 0 : i32
    %c0_i32_1 = arith.constant 0 : i32
    return %c0_i32, %c0_i32_0 : i32, i32
  }
  func.func @transform_22(%arg0: i32) -> (i32, i32) {
    %c0_i32 = arith.constant 0 : i32
    %c0_i32_0 = arith.constant 0 : i32
    %c0_i32_1 = arith.constant 0 : i32
    return %c0_i32, %c0_i32_0 : i32, i32
  }
  func.func @transform_23(%arg0: i32) -> (i32, i32) {
    %c0_i32 = arith.constant 0 : i32
    %c0_i32_0 = arith.constant 0 : i32
    %c0_i32_1 = arith.constant 0 : i32
    return %c0_i32, %c0_i32_0 : i32, i32
  }
  func.func @transform_24(%arg0: i32) -> (i32, i32) {
    %c0_i32 = arith.constant 0 : i32
    %c0_i32_0 = arith.constant 0 : i32
    %c0_i32_1 = arith.constant 0 : i32
    return %c0_i32, %c0_i32_0 : i32, i32
  }
  func.func @transform_25(%arg0: i32) -> (i32, i32) {
    %c0_i32 = arith.constant 0 : i32
    %c0_i32_0 = arith.constant 0 : i32
    %c0_i32_1 = arith.constant 0 : i32
    return %c0_i32, %c0_i32_0 : i32, i32
  }
  func.func @transform_26(%arg0: i32) -> (i32, i32) {
    %c0_i32 = arith.constant 0 : i32
    %c0_i32_0 = arith.constant 0 : i32
    %c0_i32_1 = arith.constant 0 : i32
    return %c0_i32, %c0_i32_0 : i32, i32
  }
  func.func @transform_27(%arg0: i32) -> (i32, i32) {
    %c0_i32 = arith.constant 0 : i32
    %c0_i32_0 = arith.constant 0 : i32
    %c0_i32_1 = arith.constant 0 : i32
    return %c0_i32, %c0_i32_0 : i32, i32
  }
  func.func @transform_28(%arg0: i32) -> (i32, i32, i32) {
    %c0_i32 = arith.constant 0 : i32
    %c0_i32_0 = arith.constant 0 : i32
    %c0_i32_1 = arith.constant 0 : i32
    return %arg0, %c0_i32, %c0_i32_0 : i32, i32, i32
  }
}

</mosaic_0001>

<bundles_post_ra>
// kernel: tpu_custom_call.1
= control target key start
LH: loop header
LB: loop body
LE: loop exit
PB: predicated region body
PF: predicated region fallthrough
CT: control target
= control target key end

     0   :  { %s5888_s0 = inlined_call_operand.hbm [shape: f32[2,8,32], index: 0, kind: input, shape index: {}]   ;;  %s5889_s1 = inlined_call_operand.vmem [shape: f32[2,16,32], index: 1, kind: input, shape index: {}]   ;;  %s5890_s2 = inlined_call_operand.vmem [shape: f32[32,32], index: 2, kind: input, shape index: {}]   ;;  %s5891_s3 = inlined_call_operand.vmem [shape: f32[32,32], index: 3, kind: input, shape index: {}]   ;;  %s5892_s4 = inlined_call_operand.hbm [shape: f32[32,32], index: 4, kind: input, shape index: {}]   ;;  %s5893_s5 = inlined_call_operand.hbm [shape: f32[1,32], index: 5, kind: input, shape index: {}]   ;;  %s5894_s6 = inlined_call_operand.hbm [shape: f32[1,32], index: 6, kind: input, shape index: {}]   ;;  %s5895_s7 = inlined_call_operand.hbm [shape: f32[1,32], index: 7, kind: input, shape index: {}]   ;;  %s5896_s8 = inlined_call_operand.hbm [shape: f32[32,32], index: 8, kind: input, shape index: {}]   ;;  %s5897_s9 = inlined_call_operand.hbm [shape: f32[1,32], index: 9, kind: input, shape index: {}]   ;;  %s5898_s10 = inlined_call_operand.vmem [shape: f32[32,32], index: 10, kind: input, shape index: {}]   ;;  %s5899_s11 = inlined_call_operand.hbm [shape: f32[32,32], index: 11, kind: input, shape index: {}]   ;;  %s5900_s12 = inlined_call_operand.hbm [shape: f32[32,32], index: 12, kind: input, shape index: {}]   ;;  %s5901_s13 = inlined_call_operand.hbm [shape: f32[1,32], index: 13, kind: input, shape index: {}]   ;;  %s5902_s14 = inlined_call_operand.hbm [shape: f32[1,32], index: 14, kind: input, shape index: {}]   ;;  %s5903_s15 = inlined_call_operand.hbm [shape: f32[1,32], index: 15, kind: input, shape index: {}]   ;;  %s5904_s16 = inlined_call_operand.hbm [shape: f32[32,32], index: 16, kind: input, shape index: {}]   ;;  %s5905_s17 = inlined_call_operand.hbm [shape: f32[1,32], index: 17, kind: input, shape index: {}]   ;;  %s5906_s18 = inlined_call_operand.hbm [shape: f32[32,64], index: 18, kind: input, shape index: {}]   ;;  %s5907_s19 = inlined_call_operand.vmem [shape: f32[1,64], index: 19, kind: input, shape index: {}]   ;;  %s5908_s20 = inlined_call_operand.vmem [shape: f32[64,32], index: 20, kind: input, shape index: {}]   ;;  %s5909_s21 = inlined_call_operand.vmem [shape: f32[1,32], index: 21, kind: input, shape index: {}]   ;;  %s5910_s22 = inlined_call_operand.vmem [shape: f32[1,32], index: 22, kind: input, shape index: {}]   ;;  %s5911_s23 = inlined_call_operand.vmem [shape: f32[1,32], index: 23, kind: input, shape index: {}]   ;;  %s5912_s24 = inlined_call_operand.vmem [shape: f32[1,32], index: 24, kind: input, shape index: {}]   ;;  %s5913_s25 = inlined_call_operand.vmem [shape: f32[1,32], index: 25, kind: input, shape index: {}]   ;;  %s5914_s26 = inlined_call_operand.vmem [shape: f32[1,32], index: 26, kind: input, shape index: {}]   ;;  %s5915_s27 = inlined_call_operand.vmem [shape: f32[1,32], index: 27, kind: input, shape index: {}]   ;;  %s5916_s28 = inlined_call_operand.hbm [shape: f32[2,8,32], index: 28, kind: output, shape index: {}]  }
   0x1   :  { %5956 = sst [smem:[#allocation36_spill]] %s5888_s0 }
   0x2   :  { %5957 = sst [smem:[#allocation37_spill]] %s5889_s1 }
   0x3   :  { %5958 = sst [smem:[#allocation38_spill]] %s5890_s2 }
   0x4   :  { %5959 = sst [smem:[#allocation39_spill]] %s5891_s3 }
   0x5   :  { %5960 = sst [smem:[#allocation40_spill]] %s5892_s4 }
   0x6   :  { %5961 = sst [smem:[#allocation41_spill]] %s5893_s5 }
   0x7   :  { %5962 = sst [smem:[#allocation42_spill]] %s5894_s6 }
   0x8   :  { %5963 = sst [smem:[#allocation43_spill]] %s5895_s7 }
   0x9   :  { %5964 = sst [smem:[#allocation44_spill]] %s5896_s8 }
   0xa   :  { %5965 = sst [smem:[#allocation45_spill]] %s5897_s9 }
   0xb   :  { %5966 = sst [smem:[#allocation46_spill]] %s5898_s10 }
   0xc   :  { %5967 = sst [smem:[#allocation47_spill]] %s5899_s11 }
   0xd   :  { %5968 = sst [smem:[#allocation48_spill]] %s5900_s12 }
   0xe   :  { %5969 = sst [smem:[#allocation49_spill]] %s5901_s13 }
   0xf   :  { %5970 = sst [smem:[#allocation50_spill]] %s5902_s14 }
  0x10   :  { %5971 = sst [smem:[#allocation51_spill]] %s5903_s15 }
  0x11   :  { %5972 = sst [smem:[#allocation52_spill]] %s5905_s17 }
  0x12   :  { %5973 = sst [smem:[#allocation53_spill]] %s5907_s19 }
  0x13   :  { %5974 = sst [smem:[#allocation54_spill]] %s5908_s20 }
  0x14   :  { %5975 = sst [smem:[#allocation55_spill]] %s5909_s21 }
  0x15   :  { %5976 = sst [smem:[#allocation56_spill]] %s5910_s22 }
  0x16   :  { %5977 = sst [smem:[#allocation57_spill]] %s5911_s23 }
  0x17   :  { %5978 = sst [smem:[#allocation58_spill]] %s5912_s24 }
  0x18   :  { %5979 = sst [smem:[#allocation59_spill]] %s5913_s25 }
  0x19   :  { %5980 = sst [smem:[#allocation60_spill]] %s5914_s26 }
  0x1a   :  { %5981 = sst [smem:[#allocation61_spill]] %s5915_s27 }
  0x1b   :  { %5982 = sst [smem:[#allocation62_spill]] %s5916_s28 }
  0x1c   :  { %33 = vsyncpa [#allocation3], 0 }
  0x1d   :  { %35 = vsyncpa [#allocation3 + $0x1], 0 }
  0x1e   :  { %36 = vsyncpa [#allocation6], 0 }
  0x1f   :  { %37 = vsyncpa [#allocation9], 0 }
  0x20   :  { %38 = vsyncpa [#allocation12], 0 }
  0x21   :  { %39 = vsyncpa [#allocation15], 0 }
  0x22   :  { %40 = vsyncpa [#allocation18], 0 }
  0x23   :  { %41 = vsyncpa [#allocation21], 0 }
  0x24   :  { %42 = vsyncpa [#allocation24], 0 }
  0x25   :  { %43 = vsyncpa [#allocation4], 0 }
  0x26   :  { %45 = vsyncpa [#allocation4 + $0x1], 0  ;;  %s5078_s8 = smov 0   ;;  %s5080_s5 = smov 0  }
  0x27   :  { %s5082_s9 = smov 0   ;;  %s5084_s30 = smov 0  }
  0x28 LB: > { %s4906_s3 = smov [#allocation5]   ;;  %s5099_s10 = sadd.s32 4294967295, %s4904_s30   ;;  %s4904_s30 = sphi %s5084_s30, %s6051_s30   ;;  %s4900_s9 = sphi %s5082_s9, %s6050_s9   ;;  %s4896_s5 = sphi %s5080_s5, %s6049_s5   ;;  %s4892_s8 = sphi %s5078_s8, %s6048_s8  }
  0x29   : > { %s698_s6 = sshll.u32 %s4906_s3, 4  ;;  %p3616_p0 = scmp.ge.s32.totalorder %s4904_s30, 1  ;;  %s5104_s6 = int_to_ptr.vmem [resolvable:$true] %s698_s6 }
  0x2a   : > { %p5933_p1 = scmp.eq.s32.totalorder %s5099_s10, 0  ;;  %p680_p2 = scmp.lt.s32.totalorder %s4904_s30, 3 }
  0x2b   : > { %s4907_s11 = smov [#allocation8]   ;;  %s4908_s7 = smov [#allocation11]  }
  0x2c   : > { %p5106_p3 = pnand %p3616_p0, %p680_p2  ;;  %s723_s29 = sshll.u32 %s4907_s11, 4  ;;  %s5119_s29 = int_to_ptr.vmem [resolvable:$true] %s723_s29 }
  0x2d   : > { %s744_s12 = sshll.u32 %s4908_s7, 4  ;;  %s5985_s3 = sld [smem:[#allocation40_spill]]  ;;  %s5121_s12 = int_to_ptr.vmem [resolvable:$true] %s744_s12 }
  0x2e   : > { %s5983_s0 = scalar_select %p5106_p3, 1, 0 }
  0x2f   : > { %p4182_p5 = pneg %p5106_p3 }
  0x31   : > { %p5115_p6 = pnand %p4182_p5, %p5933_p1 }
  0x33   : > { %s4388_s28 = scalar_lea.hbm %s5985_s3, 512  ;;  %p5131_p8 = pneg %p5115_p6 }
  0x34   : > { %p4389_p7 = scmp.ne.s32.totalorder %s5985_s3, %s4388_s28  ;;  %p4395_p11 = scmp.lt.u32.totalorder %s4388_s28, %s5985_s3 }
  0x36   : > { %p4391_p9 = pnand %p5131_p8, %p4389_p7 }
  0x38   : > { %p4392_p10 = pneg %p4391_p9 }
  0x3a   : > { %p4397_p12 = pnand %p4395_p11, %p4392_p10 }
  0x3c   : > { %4400 = shalt.err (!%p4397_p12)
}
  0x3d   : > { %s4401_s26 = scalar_lea.vmem %s5104_s6, 512  ;;  %p4409_p5 = scmp.lt.s32.totalorder %s5104_s6, %s5104_s6 }
  0x3e   : > { %p4402_p13 = scmp.ne.s32.totalorder %s5104_s6, %s4401_s26  ;;  %p4410_p4 = scmp.lt.s32.totalorder %s4401_s26, %s4401_s26 }
  0x40   : > { %p4404_p0 = pnand %p4402_p13, %p5131_p8  ;;  %p4411_p7 = por %p4410_p4, %p4409_p5 }
  0x42   : > { %p4405_p2 = pneg %p4404_p0 }
  0x44   : > { %p4412_p9 = pnand %p4411_p7, %p4405_p2 }
  0x46   : > { %4415 = shalt.err (!%p4412_p9)
}
  0x47   : > { %s5935_s27 = smov 128   ;;  %s5937_s21 = smov 8  }
  0x48   : > { %4185 = dma.hbm_to_vmem [thread:$0]  (!%p5115_p6), %s5985_s3, 512, %s5104_s6, [#allocation6], %s5935_s27, %s5935_s27, %s5937_s21  }
  0x49   : > { %s5987_s19 = sld [smem:[#allocation42_spill]] }
  0x4f   : > { %s4416_s26 = scalar_lea.hbm %s5987_s19, 16 }
  0x50   : > { %p4417_p4 = scmp.ne.s32.totalorder %s5987_s19, %s4416_s26  ;;  %p4423_p12 = scmp.lt.u32.totalorder %s4416_s26, %s5987_s19 }
  0x52   : > { %p4419_p10 = pnand %p4417_p4, %p5131_p8 }
  0x54   : > { %p4420_p11 = pneg %p4419_p10 }
  0x56   : > { %p4425_p13 = pnand %p4423_p12, %p4420_p11 }
  0x58   : > { %4428 = shalt.err (!%p4425_p13)
}
  0x59   : > { %s4429_s6 = scalar_lea.vmem %s5119_s29, 16  ;;  %s4436_s24 = scalar_lea.vmem %s5119_s29, 32 }
  0x5a   : > { %p4430_p0 = scmp.ne.s32.totalorder %s5119_s29, %s4429_s6  ;;  %p4437_p7 = scmp.lt.s32.totalorder %s5119_s29, %s5119_s29 }
  0x5b   : > { %p4438_p9 = scmp.lt.s32.totalorder %s4436_s24, %s4429_s6 }
  0x5c   : > { %p4432_p2 = pnand %p4430_p0, %p5131_p8 }
  0x5d   : > { %p4439_p4 = por %p4438_p9, %p4437_p7 }
  0x5e   : > { %p4433_p5 = pneg %p4432_p2 }
  0x60   : > { %p4440_p10 = pnand %p4439_p4, %p4433_p5 }
  0x62   : > { %4443 = shalt.err (!%p4440_p10)
}
  0x63   : > { %4191 = dma.hbm_to_vmem [thread:$0]  (!%p5115_p6), %s5987_s19, 16, %s5119_s29, [#allocation9]  }
  0x64   : > { %s5988_s1 = sld [smem:[#allocation44_spill]] }
  0x6a   : > { %s4444_s4 = scalar_lea.hbm %s5988_s1, 512 }
  0x6b   : > { %p4445_p11 = scmp.ne.s32.totalorder %s5988_s1, %s4444_s4  ;;  %p4451_p0 = scmp.lt.u32.totalorder %s4444_s4, %s5988_s1 }
  0x6d   : > { %p4447_p12 = pnand %p4445_p11, %p5131_p8 }
  0x6f   : > { %p4448_p13 = pneg %p4447_p12 }
  0x71   : > { %p4453_p2 = pnand %p4451_p0, %p4448_p13 }
  0x73   : > { %4456 = shalt.err (!%p4453_p2)
}
  0x74   : > { %s4457_s29 = scalar_lea.vmem %s5121_s12, 512  ;;  %p4465_p4 = scmp.lt.s32.totalorder %s5121_s12, %s5121_s12 }
  0x75   : > { %p4458_p5 = scmp.ne.s32.totalorder %s5121_s12, %s4457_s29  ;;  %p4466_p10 = scmp.lt.s32.totalorder %s4457_s29, %s4457_s29 }
  0x77   : > { %p4460_p7 = pnand %p4458_p5, %p5131_p8  ;;  %p4467_p11 = por %p4466_p10, %p4465_p4 }
  0x79   : > { %p4461_p9 = pneg %p4460_p7 }
  0x7b   : > { %p4468_p12 = pnand %p4467_p11, %p4461_p9 }
  0x7d   : > { %4471 = shalt.err (!%p4468_p12)
}
  0x7e   : > { %4197 = dma.hbm_to_vmem [thread:$0]  (!%p5115_p6), %s5988_s1, 512, %s5121_s12, [#allocation12], %s5935_s27, %s5935_s27, %s5937_s21  }
  0x7f   : > { %s4911_s25 = smov [#allocation14]   ;;  %s4912_s4 = smov [#allocation17]  }
  0x80   : > { %s771_s28 = sshll.u32 %s4911_s25, 4  ;;  %s798_s7 = sshll.u32 %s4912_s4, 4  ;;  %s772_s28 = int_to_ptr.vmem [resolvable:$true] %s771_s28  ;;  %s799_s7 = int_to_ptr.vmem [resolvable:$true] %s798_s7 }
  0x81   : > { %s5989_s24 = sld [smem:[#allocation47_spill]] }
  0x87   : > { %s4472_s29 = scalar_lea.hbm %s5989_s24, 512 }
  0x88   : > { %p4473_p13 = scmp.ne.s32.totalorder %s5989_s24, %s4472_s29  ;;  %p4479_p5 = scmp.lt.u32.totalorder %s4472_s29, %s5989_s24 }
  0x8a   : > { %p4475_p0 = pnand %p4473_p13, %p5131_p8 }
  0x8c   : > { %p4476_p2 = pneg %p4475_p0 }
  0x8e   : > { %p4481_p7 = pnand %p4479_p5, %p4476_p2 }
  0x90   : > { %4484 = shalt.err (!%p4481_p7)
}
  0x91   : > { %s4485_s12 = scalar_lea.vmem %s772_s28, 512  ;;  %p4493_p11 = scmp.lt.s32.totalorder %s772_s28, %s772_s28 }
  0x92   : > { %p4486_p9 = scmp.ne.s32.totalorder %s772_s28, %s4485_s12  ;;  %p4494_p12 = scmp.lt.s32.totalorder %s4485_s12, %s4485_s12 }
  0x94   : > { %p4488_p4 = pnand %p4486_p9, %p5131_p8  ;;  %p4495_p1 = por %p4494_p12, %p4493_p11 }
  0x96   : > { %p4489_p10 = pneg %p4488_p4 }
  0x98   : > { %p4496_p3 = pnand %p4495_p1, %p4489_p10 }
  0x9a   : > { %4499 = shalt.err (!%p4496_p3)
}
  0x9b   : > { %4203 = dma.hbm_to_vmem [thread:$0]  (!%p5115_p6), %s5989_s24, 512, %s772_s28, [#allocation15], %s5935_s27, %s5935_s27, %s5937_s21  }
  0x9c   : > { %s5990_s13 = sld [smem:[#allocation49_spill]] }
  0xa2   : > { %s4500_s25 = scalar_lea.hbm %s5990_s13, 16 }
  0xa3   : > { %p4501_p1 = scmp.ne.s32.totalorder %s5990_s13, %s4500_s25  ;;  %p4507_p0 = scmp.lt.u32.totalorder %s4500_s25, %s5990_s13 }
  0xa5   : > { %p4503_p3 = pnand %p4501_p1, %p5131_p8 }
  0xa7   : > { %p4504_p13 = pneg %p4503_p3 }
  0xa9   : > { %p4509_p2 = pnand %p4507_p0, %p4504_p13 }
  0xab   : > { %4512 = shalt.err (!%p4509_p2)
}
  0xac   : > { %s4513_s20 = scalar_lea.vmem %s799_s7, 16  ;;  %s4520_s28 = scalar_lea.vmem %s799_s7, 32 }
  0xad   : > { %p4514_p5 = scmp.ne.s32.totalorder %s799_s7, %s4513_s20  ;;  %p4521_p4 = scmp.lt.s32.totalorder %s799_s7, %s799_s7 }
  0xae   : > { %p4522_p10 = scmp.lt.s32.totalorder %s4520_s28, %s4513_s20 }
  0xaf   : > { %p4516_p7 = pnand %p4514_p5, %p5131_p8 }
  0xb0   : > { %p4523_p11 = por %p4522_p10, %p4521_p4 }
  0xb1   : > { %p4517_p9 = pneg %p4516_p7 }
  0xb3   : > { %p4524_p12 = pnand %p4523_p11, %p4517_p9 }
  0xb5   : > { %4527 = shalt.err (!%p4524_p12)
}
  0xb6   : > { %4209 = dma.hbm_to_vmem [thread:$0]  (!%p5115_p6), %s5990_s13, 16, %s799_s7, [#allocation18]  }
  0xb7   : > { %s4913_s22 = smov [#allocation20]   ;;  %s4914_s23 = smov [#allocation23]  }
  0xb8   : > { %s820_s3 = sshll.u32 %s4913_s22, 4  ;;  %s844_s25 = sshll.u32 %s4914_s23, 4  ;;  %s821_s3 = int_to_ptr.vmem [resolvable:$true] %s820_s3  ;;  %s845_s25 = int_to_ptr.vmem [resolvable:$true] %s844_s25 }
  0xb9   : > { %s5991_s15 = sld [smem:[#allocation51_spill]] }
  0xbf   : > { %s4528_s6 = scalar_lea.hbm %s5991_s15, 16 }
  0xc0   : > { %p4529_p1 = scmp.ne.s32.totalorder %s5991_s15, %s4528_s6  ;;  %p4535_p0 = scmp.lt.u32.totalorder %s4528_s6, %s5991_s15 }
  0xc2   : > { %p4531_p3 = pnand %p4529_p1, %p5131_p8 }
  0xc4   : > { %p4532_p13 = pneg %p4531_p3 }
  0xc6   : > { %p4537_p2 = pnand %p4535_p0, %p4532_p13 }
  0xc8   : > { %4540 = shalt.err (!%p4537_p2)
}
  0xc9   : > { %s4541_s7 = scalar_lea.vmem %s821_s3, 16  ;;  %s4548_s19 = scalar_lea.vmem %s821_s3, 32 }
  0xca   : > { %p4542_p5 = scmp.ne.s32.totalorder %s821_s3, %s4541_s7  ;;  %p4549_p4 = scmp.lt.s32.totalorder %s821_s3, %s821_s3 }
  0xcb   : > { %p4550_p10 = scmp.lt.s32.totalorder %s4548_s19, %s4541_s7 }
  0xcc   : > { %p4544_p7 = pnand %p4542_p5, %p5131_p8 }
  0xcd   : > { %p4551_p11 = por %p4550_p10, %p4549_p4 }
  0xce   : > { %p4545_p9 = pneg %p4544_p7 }
  0xd0   : > { %p4552_p12 = pnand %p4551_p11, %p4545_p9 }
  0xd2   : > { %4555 = shalt.err (!%p4552_p12)
}
  0xd3   : > { %4215 = dma.hbm_to_vmem [thread:$0]  (!%p5115_p6), %s5991_s15, 16, %s821_s3, [#allocation21]  }
  0xd4   : > { %s5992_s17 = sld [smem:[#allocation52_spill]] }
  0xda   : > { %s4556_s6 = scalar_lea.hbm %s5992_s17, 16 }
  0xdb   : > { %p4557_p1 = scmp.ne.s32.totalorder %s5992_s17, %s4556_s6  ;;  %p4563_p0 = scmp.lt.u32.totalorder %s4556_s6, %s5992_s17 }
  0xdd   : > { %p4559_p3 = pnand %p4557_p1, %p5131_p8 }
  0xdf   : > { %p4560_p13 = pneg %p4559_p3 }
  0xe1   : > { %p4565_p2 = pnand %p4563_p0, %p4560_p13 }
  0xe3   : > { %4568 = shalt.err (!%p4565_p2)
}
  0xe4   : > { %s4569_s7 = scalar_lea.vmem %s845_s25, 16  ;;  %s4576_s3 = scalar_lea.vmem %s845_s25, 32 }
  0xe5   : > { %p4570_p5 = scmp.ne.s32.totalorder %s845_s25, %s4569_s7  ;;  %p4577_p4 = scmp.lt.s32.totalorder %s845_s25, %s845_s25 }
  0xe6   : > { %p4578_p10 = scmp.lt.s32.totalorder %s4576_s3, %s4569_s7 }
  0xe7   : > { %p4572_p7 = pnand %p4570_p5, %p5131_p8 }
  0xe8   : > { %p4579_p11 = por %p4578_p10, %p4577_p4 }
  0xe9   : > { %p4573_p9 = pneg %p4572_p7 }
  0xeb   : > { %p4580_p12 = pnand %p4579_p11, %p4573_p9 }
  0xed   : > { %4583 = shalt.err (!%p4580_p12)
}
  0xee   : > { %4221 = dma.hbm_to_vmem [thread:$0]  (!%p5115_p6), %s5992_s17, 16, %s845_s25, [#allocation24]  }
  0xef   : > { %s4915_s23 = smov [#allocation7]   ;;  %s4916_s26 = smov [#allocation10]  }
  0xf0   : > { %s712_s4 = sshll.u32 %s4915_s23, 4  ;;  %s734_s6 = sshll.u32 %s4916_s26, 4  ;;  %s713_s4 = int_to_ptr.vmem [resolvable:$true] %s712_s4  ;;  %s735_s6 = int_to_ptr.vmem [resolvable:$true] %s734_s6 }
  0xf1   : > { %s5993_s28 = sld [smem:[#allocation41_spill]] }
  0xf7   : > { %s4584_s12 = scalar_lea.hbm %s5993_s28, 16 }
  0xf8   : > { %p4585_p1 = scmp.ne.s32.totalorder %s5993_s28, %s4584_s12  ;;  %p4591_p0 = scmp.lt.u32.totalorder %s4584_s12, %s5993_s28 }
  0xfa   : > { %p4587_p3 = pnand %p4585_p1, %p5131_p8 }
  0xfc   : > { %p4588_p13 = pneg %p4587_p3 }
  0xfe   : > { %p4593_p2 = pnand %p4591_p0, %p4588_p13 }
 0x100   : > { %4596 = shalt.err (!%p4593_p2)
}
 0x101   : > { %s4597_s25 = scalar_lea.vmem %s713_s4, 16  ;;  %s4604_s22 = scalar_lea.vmem %s713_s4, 32 }
 0x102   : > { %p4598_p5 = scmp.ne.s32.totalorder %s713_s4, %s4597_s25  ;;  %p4605_p4 = scmp.lt.s32.totalorder %s713_s4, %s713_s4 }
 0x103   : > { %p4606_p10 = scmp.lt.s32.totalorder %s4604_s22, %s4597_s25 }
 0x104   : > { %p4600_p7 = pnand %p4598_p5, %p5131_p8 }
 0x105   : > { %p4607_p11 = por %p4606_p10, %p4605_p4 }
 0x106   : > { %p4601_p9 = pneg %p4600_p7 }
 0x108   : > { %p4608_p12 = pnand %p4607_p11, %p4601_p9 }
 0x10a   : > { %4611 = shalt.err (!%p4608_p12)
}
 0x10b   : > { %4188 = dma.hbm_to_vmem [thread:$0]  (!%p5115_p6), %s5993_s28, 16, %s713_s4, [#allocation6]  }
 0x10c   : > { %s5994_s20 = sld [smem:[#allocation43_spill]] }
 0x112   : > { %s4612_s12 = scalar_lea.hbm %s5994_s20, 16 }
 0x113   : > { %p4613_p1 = scmp.ne.s32.totalorder %s5994_s20, %s4612_s12  ;;  %p4619_p0 = scmp.lt.u32.totalorder %s4612_s12, %s5994_s20 }
 0x115   : > { %p4615_p3 = pnand %p4613_p1, %p5131_p8 }
 0x117   : > { %p4616_p13 = pneg %p4615_p3 }
 0x119   : > { %p4621_p2 = pnand %p4619_p0, %p4616_p13 }
 0x11b   : > { %4624 = shalt.err (!%p4621_p2)
}
 0x11c   : > { %s4625_s22 = scalar_lea.vmem %s735_s6, 16  ;;  %s4632_s4 = scalar_lea.vmem %s735_s6, 32 }
 0x11d   : > { %p4626_p5 = scmp.ne.s32.totalorder %s735_s6, %s4625_s22  ;;  %p4633_p4 = scmp.lt.s32.totalorder %s735_s6, %s735_s6 }
 0x11e   : > { %p4634_p10 = scmp.lt.s32.totalorder %s4632_s4, %s4625_s22 }
 0x11f   : > { %p4628_p7 = pnand %p4626_p5, %p5131_p8 }
 0x120   : > { %p4635_p11 = por %p4634_p10, %p4633_p4 }
 0x121   : > { %p4629_p9 = pneg %p4628_p7 }
 0x123   : > { %p4636_p12 = pnand %p4635_p11, %p4629_p9 }
 0x125   : > { %4639 = shalt.err (!%p4636_p12)
}
 0x126   : > { %4194 = dma.hbm_to_vmem [thread:$0]  (!%p5115_p6), %s5994_s20, 16, %s735_s6, [#allocation9]  }
 0x127   : > { %s4917_s27 = smov [#allocation13]   ;;  %s4918_s12 = smov [#allocation16]  }
 0x128   : > { %s758_s29 = sshll.u32 %s4917_s27, 4  ;;  %s784_s7 = sshll.u32 %s4918_s12, 4  ;;  %s759_s29 = int_to_ptr.vmem [resolvable:$true] %s758_s29  ;;  %s785_s7 = int_to_ptr.vmem [resolvable:$true] %s784_s7 }
 0x129   : > { %s5995_s25 = sld [smem:[#allocation45_spill]] }
 0x12f   : > { %s4640_s21 = scalar_lea.hbm %s5995_s25, 16 }
 0x130   : > { %p4641_p1 = scmp.ne.s32.totalorder %s5995_s25, %s4640_s21  ;;  %p4647_p0 = scmp.lt.u32.totalorder %s4640_s21, %s5995_s25 }
 0x132   : > { %p4643_p3 = pnand %p4641_p1, %p5131_p8 }
 0x134   : > { %p4644_p13 = pneg %p4643_p3 }
 0x136   : > { %p4649_p2 = pnand %p4647_p0, %p4644_p13 }
 0x138   : > { %4652 = shalt.err (!%p4649_p2)
}
 0x139   : > { %s4653_s6 = scalar_lea.vmem %s759_s29, 16  ;;  %s4660_s26 = scalar_lea.vmem %s759_s29, 32 }
 0x13a   : > { %p4654_p5 = scmp.ne.s32.totalorder %s759_s29, %s4653_s6  ;;  %p4661_p4 = scmp.lt.s32.totalorder %s759_s29, %s759_s29 }
 0x13b   : > { %p4662_p10 = scmp.lt.s32.totalorder %s4660_s26, %s4653_s6 }
 0x13c   : > { %p4656_p7 = pnand %p4654_p5, %p5131_p8 }
 0x13d   : > { %p4663_p11 = por %p4662_p10, %p4661_p4 }
 0x13e   : > { %p4657_p9 = pneg %p4656_p7 }
 0x140   : > { %p4664_p12 = pnand %p4663_p11, %p4657_p9 }
 0x142   : > { %4667 = shalt.err (!%p4664_p12)
}
 0x143   : > { %4200 = dma.hbm_to_vmem [thread:$0]  (!%p5115_p6), %s5995_s25, 16, %s759_s29, [#allocation12]  }
 0x144   : > { %s5996_s3 = sld [smem:[#allocation48_spill]] }
 0x14a   : > { %s4668_s19 = scalar_lea.hbm %s5996_s3, 512 }
 0x14b   : > { %p4669_p1 = scmp.ne.s32.totalorder %s5996_s3, %s4668_s19  ;;  %p4675_p0 = scmp.lt.u32.totalorder %s4668_s19, %s5996_s3 }
 0x14d   : > { %p4671_p3 = pnand %p4669_p1, %p5131_p8 }
 0x14f   : > { %p4672_p13 = pneg %p4671_p3 }
 0x151   : > { %p4677_p2 = pnand %p4675_p0, %p4672_p13 }
 0x153   : > { %4680 = shalt.err (!%p4677_p2)
}
 0x154   : > { %s4681_s26 = scalar_lea.vmem %s785_s7, 512  ;;  %p4689_p4 = scmp.lt.s32.totalorder %s785_s7, %s785_s7 }
 0x155   : > { %p4682_p5 = scmp.ne.s32.totalorder %s785_s7, %s4681_s26  ;;  %p4690_p10 = scmp.lt.s32.totalorder %s4681_s26, %s4681_s26 }
 0x157   : > { %p4684_p7 = pnand %p4682_p5, %p5131_p8  ;;  %p4691_p11 = por %p4690_p10, %p4689_p4 }
 0x159   : > { %p4685_p9 = pneg %p4684_p7 }
 0x15b   : > { %p4692_p12 = pnand %p4691_p11, %p4685_p9 }
 0x15d   : > { %4695 = shalt.err (!%p4692_p12)
}
 0x15e   : > { %s5997_s29 = smov 8   ;;  %s5998_s27 = smov 128  }
 0x15f   : > { %4206 = dma.hbm_to_vmem [thread:$0]  (!%p5115_p6), %s5996_s3, 512, %s785_s7, [#allocation15], %s5998_s27, %s5998_s27, %s5997_s29  }
 0x160   : > { %s4919_s1 = smov [#allocation19]   ;;  %s4920_s22 = smov [#allocation22]  }
 0x161   : > { %s809_s19 = sshll.u32 %s4919_s1, 4  ;;  %s830_s4 = sshll.u32 %s4920_s22, 4  ;;  %s810_s19 = int_to_ptr.vmem [resolvable:$true] %s809_s19  ;;  %s831_s4 = int_to_ptr.vmem [resolvable:$true] %s830_s4 }
 0x162   : > { %s5999_s14 = sld [smem:[#allocation50_spill]] }
 0x168   : > { %s4696_s26 = scalar_lea.hbm %s5999_s14, 16 }
 0x169   : > { %p4697_p1 = scmp.ne.s32.totalorder %s5999_s14, %s4696_s26  ;;  %p4703_p0 = scmp.lt.u32.totalorder %s4696_s26, %s5999_s14 }
 0x16b   : > { %p4699_p3 = pnand %p4697_p1, %p5131_p8 }
 0x16d   : > { %p4700_p13 = pneg %p4699_p3 }
 0x16f   : > { %p4705_p2 = pnand %p4703_p0, %p4700_p13 }
 0x171   : > { %4708 = shalt.err (!%p4705_p2)
}
 0x172   : > { %s4709_s7 = scalar_lea.vmem %s810_s19, 16  ;;  %s4716_s21 = scalar_lea.vmem %s810_s19, 32 }
 0x173   : > { %p4710_p5 = scmp.ne.s32.totalorder %s810_s19, %s4709_s7  ;;  %p4717_p4 = scmp.lt.s32.totalorder %s810_s19, %s810_s19 }
 0x174   : > { %p4718_p10 = scmp.lt.s32.totalorder %s4716_s21, %s4709_s7 }
 0x175   : > { %p4712_p7 = pnand %p4710_p5, %p5131_p8 }
 0x176   : > { %p4719_p11 = por %p4718_p10, %p4717_p4 }
 0x177   : > { %p4713_p9 = pneg %p4712_p7 }
 0x179   : > { %p4720_p12 = pnand %p4719_p11, %p4713_p9 }
 0x17b   : > { %4723 = shalt.err (!%p4720_p12)
}
 0x17c   : > { %4212 = dma.hbm_to_vmem [thread:$0]  (!%p5115_p6), %s5999_s14, 16, %s810_s19, [#allocation18]  }
 0x17d   : > { %s4724_s22 = scalar_lea.hbm %s5904_s16, 512 }
 0x17e   : > { %p4725_p1 = scmp.ne.s32.totalorder %s5904_s16, %s4724_s22  ;;  %p4731_p0 = scmp.lt.u32.totalorder %s4724_s22, %s5904_s16 }
 0x180   : > { %p4727_p3 = pnand %p4725_p1, %p5131_p8 }
 0x182   : > { %p4728_p13 = pneg %p4727_p3 }
 0x184   : > { %p4733_p2 = pnand %p4731_p0, %p4728_p13 }
 0x186   : > { %4736 = shalt.err (!%p4733_p2)
}
 0x187   : > { %s4737_s7 = scalar_lea.vmem %s831_s4, 512  ;;  %p4745_p4 = scmp.lt.s32.totalorder %s831_s4, %s831_s4 }
 0x188   : > { %p4738_p5 = scmp.ne.s32.totalorder %s831_s4, %s4737_s7  ;;  %p4746_p10 = scmp.lt.s32.totalorder %s4737_s7, %s4737_s7 }
 0x18a   : > { %p4740_p7 = pnand %p4738_p5, %p5131_p8  ;;  %p4747_p11 = por %p4746_p10, %p4745_p4 }
 0x18c   : > { %p4741_p9 = pneg %p4740_p7 }
 0x18e   : > { %p4748_p12 = pnand %p4747_p11, %p4741_p9 }
 0x190   : > { %4751 = shalt.err (!%p4748_p12)
}
 0x191   : > { %4218 = dma.hbm_to_vmem [thread:$0]  (!%p5115_p6), %s5904_s16, 512, %s831_s4, [#allocation21], %s5998_s27, %s5998_s27, %s5997_s29  }
 0x192   : > { %s4921_s13 = smov [#allocation25]   ;;  %s4752_s22 = scalar_lea.hbm %s5906_s18, 512 }
 0x193   : > { %s854_s15 = sshll.u32 %s4921_s13, 4  ;;  %p4753_p1 = scmp.ne.s32.totalorder %s5906_s18, %s4752_s22  ;;  %s855_s15 = int_to_ptr.vmem [resolvable:$true] %s854_s15 }
 0x194   : > { %p4759_p0 = scmp.lt.u32.totalorder %s4752_s22, %s5906_s18 }
 0x195   : > { %p4755_p3 = pnand %p4753_p1, %p5131_p8 }
 0x197   : > { %p4756_p13 = pneg %p4755_p3 }
 0x199   : > { %p4761_p2 = pnand %p4759_p0, %p4756_p13 }
 0x19b   : > { %4764 = shalt.err (!%p4761_p2)
}
 0x19c   : > { %s4765_s4 = scalar_lea.vmem %s855_s15, 512  ;;  %p4773_p4 = scmp.lt.s32.totalorder %s855_s15, %s855_s15 }
 0x19d   : > { %p4766_p5 = scmp.ne.s32.totalorder %s855_s15, %s4765_s4  ;;  %p4774_p10 = scmp.lt.s32.totalorder %s4765_s4, %s4765_s4 }
 0x19f   : > { %p4768_p7 = pnand %p4766_p5, %p5131_p8  ;;  %p4775_p11 = por %p4774_p10, %p4773_p4 }
 0x1a1   : > { %p4769_p9 = pneg %p4768_p7 }
 0x1a3   : > { %p4776_p12 = pnand %p4775_p11, %p4769_p9 }
 0x1a5   : > { %4779 = shalt.err (!%p4776_p12)
}
 0x1a6   : > { %4224 = dma.hbm_to_vmem [thread:$0]  (!%p5115_p6), %s5906_s18, 512, %s855_s15, [#allocation24], %s5998_s27, %s5998_s27, %s5997_s29  }
 0x1a7   : > { %s3615_s2 = sadd.s32 4294967294, %s4904_s30   ;;  %s5417_s11 = sadd.s32 1, %s4904_s30  }
 0x1a8   : > { %s55_s21 = ssub.s32 %s4904_s30, %s5417_s11  ;;  %s58_s13 = sadd.s32 1, %s4900_s9 }
 0x1a9   : > { %p56_p8 = scmp.eq.s32.totalorder %s55_s21, 0  ;;  %p65_p1 = scmp.ne.s32.totalorder %s4900_s9, %s4896_s5 }
 0x1aa   : > { %p66_p3 = scmp.eq.s32.totalorder %s4904_s30, 0  ;;  %p71_p13 = scmp.ne.s32.totalorder %s4896_s5, %s4892_s8 }
 0x1ab   : > { %s5428_s17 = scalar_select %p56_p8, %s4900_s9, %s58_s13  }
 0x1ac   : > { %p5430_p0 = por %p66_p3, %p65_p1  ;;  %p6001_p2 = scmp.eq.s32.totalorder %s5099_s10, 0 }
 0x1ad   : > { %p667_p5 = scmp.eq.s32.totalorder %s5099_s10, 1  ;;  %p673_p7 = scmp.eq.s32.totalorder %s3615_s2, 1 }
 0x1ae   : > { %p5436_p6 = por %p6001_p2, %p71_p13  ;;  %p4247_p9 = scmp.lt.s32.totalorder %s4904_s30, 2 }
 0x1af   : > { %s895_s27 = sand.u32 1, %s4900_s9   ;;  %p5443_p4 = por %p667_p5, %p65_p1 }
 0x1b0   : > { %p5447_p10 = por %p673_p7, %p71_p13  ;;  %s3632_s23 = sshll.u32 %s895_s27, 3 }
 0x1b1   : > { %s6003_s15 = scalar_select %p5443_p4, 1, 0 }
 0x1b2   : > { %s6004_s22 = scalar_select %p5447_p10, 1, 0 }
 0x1b3   : > { %s3633_s6 = sshll.u32 %s4904_s30, 7  ;;  %s6005_s4 = sld [smem:[#allocation36_spill]] }
 0x1b4   : > { %s899_s19 = scalar_lea.vmem [#allocation2], %s3632_s23  ;;  %p5461_p11 = pnand %p4247_p9, %p5430_p0 }
 0x1b5   : > { %s906_s2 = sshll.u32 %s899_s19, 4  ;;  %s896_s13 = scalar_lea.sflag [#allocation3], %s895_s27  ;;  %s5457_s2 = int_to_ptr.vmem [resolvable:$true] %s906_s2 }
 0x1b6   : > { %p4782_p8 = pneg %p5461_p11 }
 0x1b9   : > { %s5455_s7 = scalar_lea.hbm %s6005_s4, %s3633_s6  ;;  %s4785_s26 = scalar_lea.hbm %s6005_s4, 256 }
 0x1ba   : > { %s4780_s3 = scalar_lea.hbm %s5455_s7, 128  ;;  %p4786_p13 = scmp.lt.u32.totalorder %s5455_s7, %s6005_s4 }
 0x1bb   : > { %p4781_p12 = scmp.ne.s32.totalorder %s5455_s7, %s4780_s3  ;;  %p4787_p0 = scmp.lt.u32.totalorder %s4785_s26, %s4780_s3 }
 0x1bc   : > { %p4789_p5 = scmp.lt.u32.totalorder %s4780_s3, %s5455_s7 }
 0x1bd   : > { %p4783_p1 = pnand %p4782_p8, %p4781_p12  ;;  %p4788_p2 = por %p4787_p0, %p4786_p13 }
 0x1bf   : > { %p4784_p3 = pneg %p4783_p1  ;;  %p4790_p7 = por %p4789_p5, %p4788_p2 }
 0x1c1   : > { %p4791_p9 = pnand %p4790_p7, %p4784_p3 }
 0x1c3   : > { %4794 = shalt.err (!%p4791_p9)
}
 0x1c4   : > { %s4795_s27 = scalar_lea.vmem %s5457_s2, 128  ;;  %s4922_s19 = smov [#allocation2]  }
 0x1c5   : > { %p4796_p12 = scmp.ne.s32.totalorder %s5457_s2, %s4795_s27  ;;  %s4800_s23 = sshll.u32 %s4922_s19, 4  ;;  %s4801_s23 = int_to_ptr.vmem [resolvable:$false] %s4800_s23 }
 0x1c6   : > { %s4802_s6 = scalar_lea.vmem %s4801_s23, 256  ;;  %p4803_p4 = scmp.lt.s32.totalorder %s5457_s2, %s4801_s23 }
 0x1c7   : > { %p4798_p1 = pnand %p4796_p12, %p4782_p8  ;;  %p4804_p13 = scmp.lt.s32.totalorder %s4802_s6, %s4795_s27 }
 0x1c9   : > { %p4799_p10 = pneg %p4798_p1  ;;  %p4805_p0 = por %p4804_p13, %p4803_p4 }
 0x1cb   : > { %p4806_p2 = pnand %p4805_p0, %p4799_p10 }
 0x1cd   : > { %4809 = shalt.err (!%p4806_p2)
}
 0x1ce   : > { %4228 = dma.hbm_to_vmem [thread:$0]  (!%p5461_p11), %s5455_s7, 128, %s5457_s2, %s896_s13  }
 0x1cf   : > { %p6007_p3 = scmp.ne.s32.totalorder %s5983_s0, 0 }
 0x1d0   : > { %s5493_s3 = sand.u32 (!%p6007_p3), 1, %s4896_s5  }
 0x1d1   : > { %923 = sbr.rel (%p6007_p3) target bundleno = 6207 (0x183f), region = 132  ;;  %s5942_s26 = sshll.u32 (!%p6007_p3), %s5493_s3, 3 }
 0x1d2   : > { %s926_s1 = scalar_lea.sflag (!%p6007_p3), [#allocation3], %s5493_s3  ;;  %s5499_s12 = scalar_lea.vmem (!%p6007_p3), [#allocation2], %s5942_s26 }
 0x1d8   : > { %4855 = dma.done.wait (%p5436_p6), %s926_s1, 128  }
 0x1d9   : > { %4857 = vsyncadd (%p5436_p6), %s926_s1, 4294967168  ;;  %p6008_p4 = scmp.eq.s32.totalorder %s5099_s10, 0 }
 0x1db   : > { %4859 = dma.done.wait (%p6008_p4), [#allocation6], 528   ;;  %p6009_p10 = pmov %p6008_p4 }
 0x1dc   : > { %p6010_p11 = pmov %p6008_p4 }
 0x1dd   : > { %4861 = vsyncadd (%p6009_p10), [#allocation6], 4294966768 }
 0x1de   : > { %4863 = dma.done.wait (%p6010_p11), [#allocation9], 32   ;;  %p6011_p8 = pmov %p6008_p4 }
 0x1df   : > { %p6012_p5 = pmov %p6008_p4 }
 0x1e0   : > { %4865 = vsyncadd (%p6011_p8), [#allocation9], 4294967264 }
 0x1e1   : > { %4867 = dma.done.wait (%p6012_p5), [#allocation12], 528   ;;  %p6013_p7 = pmov %p6008_p4 }
 0x1e2   : > { %p6014_p6 = pmov %p6008_p4 }
 0x1e3   : > { %4869 = vsyncadd (%p6013_p7), [#allocation12], 4294966768 }
 0x1e4   : > { %4871 = dma.done.wait (%p6014_p6), [#allocation15], 1024   ;;  %p6015_p9 = pmov %p6008_p4 }
 0x1e5   : > { %p6016_p12 = pmov %p6008_p4 }
 0x1e6   : > { %4873 = vsyncadd (%p6015_p9), [#allocation15], 4294966272 }
 0x1e7   : > { %4875 = dma.done.wait (%p6016_p12), [#allocation18], 32   ;;  %p6017_p1 = pmov %p6008_p4 }
 0x1e9   : > { %4877 = vsyncadd (%p6017_p1), [#allocation18], 4294967264  ;;  %p6018_p13 = pmov %p6017_p1 }
 0x1ea   : > { %p6019_p0 = pmov %p6017_p1 }
 0x1eb   : > { %4879 = dma.done.wait (%p6018_p13), [#allocation21], 528  }
 0x1ec   : > { %4881 = vsyncadd (%p6019_p0), [#allocation21], 4294966768  ;;  %p6020_p2 = pmov %p6019_p0 }
 0x1ed   : > { %p6021_p3 = pmov %p6019_p0 }
 0x1ee   : > { %4883 = dma.done.wait (%p6020_p2), [#allocation24], 528  }
 0x1ef   : > { %4885 = vsyncadd (%p6021_p3), [#allocation24], 4294966768  ;;  %v4923_v0 = vmov 0.0|0.0   ;;  %vm4924_vm0 = vmmov 0   ;;  %v4925_v1 = vmov 0.0   ;;  %s6022_s7 = sld [smem:[#allocation38_spill]] }
 0x1f0   : > { %4024 = vmatprep.subr.bf16.mxu1 %v4923_v0  ;;  %3818 = vmatprep.mubr.msk.f32.mxu1 %vm4924_vm0, %v4925_v1  ;;  %s6023_s0 = sld [smem:[#allocation39_spill]]  ;;  %v5559_v10 = vld [vmem:[%s5499_s12] sm:$0xff]  ;;  %vm1097_vm1 = vcmask 261120   ;;  %v1079_v15 = vld [vmem:[#allocation5] sm:$0xff]  ;;  %v1080_v16 = vld [vmem:[#allocation5 + $0x8] sm:$0xff]  ;;  %vm1324_vm2 = vcmask 64512  }
 0x1f1   : > { %4036 = vmatprep.subr.bf16.mxu0 %v4923_v0  ;;  %3840 = vmatprep.mubr.msk.f32.mxu0 %vm4924_vm0, %v4925_v1  ;;  %v1081_v17 = vld [vmem:[#allocation5 + $0x10] sm:$0xff]  ;;  %v4037_v18 = vpack.c.bf16 %v1080_v16, %v1079_v15  ;;  %v1082_v19 = vld [vmem:[#allocation5 + $0x18] sm:$0xff]  ;;  %v3653_v23 = vld [vmem:[#allocation7] ss:$0 sm:$0xff]  ;;  %s5948_s12 = smov 112   ;;  %s5950_s23 = smov 120  }
 0x1f2   : > { %v4040_v20 = vpack.c.bf16 %v1082_v19, %v1081_v17  ;;  %v3655_v24 = vld [vmem:[#allocation8] ss:$0 sm:$0xff]  ;;  %s5946_s6 = smov 104   ;;  %v3657_v30 = vld [vmem:[#allocation10] ss:$0 sm:$0xff]  ;;  %s5944_s1 = smov 8   ;;  %vm5690_vm5 = vmpackc.low %vm1324_vm2, %vm1324_vm2 }
 0x1f3   : > { %4038 = vmatpush3.bf16.msra.mxu0 %v4037_v18  ;;  %s5945_s29 = smov 16   ;;  %s5943_s2 = smov 24   ;;  %vm1994_vm3 = vcmask 130048   ;;  %vm1996_vm4 = vcmask 195584   ;;  %vm3281_vm6 = vcmask 523264  }
 0x1f4   : > { %4039 = vmatprep.subr.bf16.mxu0 %v4923_v0  ;;  %p1063_p4 = scmp.lt.s32.totalorder %s5099_s10, 1  ;;  %s6024_s26 = sld [smem:[#allocation37_spill]] }
 0x1f5   : > { %v1071_v2 = vld [vmem:[%s6022_s7] sm:$0xff]  ;;  %v1072_v3 = vld [vmem:[%s6022_s7 + $0x8] sm:$0xff]  ;;  %v1073_v4 = vld [vmem:[%s6022_s7 + $0x10] sm:$0xff]  ;;  %s6027_s19 = sld [smem:[#allocation57_spill]]  ;;  %s6036_s27 = sld [smem:[#allocation54_spill]] }
 0x1f6   : > { %v4025_v5 = vpack.c.bf16 %v1072_v3, %v1071_v2  ;;  %v1074_v6 = vld [vmem:[%s6022_s7 + $0x18] sm:$0xff]  ;;  %v1075_v8 = vld [vmem:[%s6023_s0] sm:$0xff]  ;;  %v1076_v9 = vld [vmem:[%s6023_s0 + $0x8] sm:$0xff]  ;;  %s1064_s21 = scalar_select %p1063_p4, %s5099_s10, 1 }
 0x1f7   : > { %v4028_v7 = vpack.c.bf16 %v1074_v6, %v1073_v4  ;;  %v4031_v11 = vpack.c.bf16 %v1076_v9, %v1075_v8  ;;  %v1077_v12 = vld [vmem:[%s6023_s0 + $0x10] sm:$0xff]  ;;  %v1078_v13 = vld [vmem:[%s6023_s0 + $0x18] sm:$0xff]  ;;  %4041 = vmatpush3.bf16.msra.mxu0 %v4040_v20  ;;  %s6044_s7 = sld [smem:[#allocation62_spill]]  ;;  %s3387_s0 = scalar_lea.sflag [#allocation4], %s5493_s3 }
 0x1f8   : > { %4026 = vmatpush3.bf16.msra.mxu1 %v4025_v5  ;;  %v4034_v14 = vpack.c.bf16 %v1078_v13, %v1077_v12  ;;  %3853 = vmatprep.subr.mxu0 %v4925_v1  ;;  %s3713_s13 = sshll.u32 %s1064_s21, 4  ;;  %s6031_s21 = smov 112  }
 0x1f9   : > { %4027 = vmatprep.subr.bf16.mxu1 %v4923_v0  ;;  %p6045_p11 = scmp.ne.s32.totalorder %s6003_s15, 0 }
 0x1fa   : > { %3841 = vmatmul.mubr.msk.f32.vlgmr.msra.gmra.mrb[0].mxu0 %vm1097_vm1, %v5559_v10 }
 0x1fb   : > { %3855 = vmatprep.mubr.msk.f32.mxu0 %vm4924_vm0, %v4925_v1 }
 0x1fc   : > { %4029 = vmatpush3.bf16.msra.mxu1 %v4028_v7 }
 0x1fd   : > { %4030 = vmatprep.subr.bf16.mxu1 %v4923_v0 }
 0x1ff   : > { %3819 = vmatmul.mubr.msk.f32.vlgmr.msra.gmra.mrb[0].mxu1 %vm1097_vm1, %v5559_v10 }
 0x200   : > { %4032 = vmatpush3.bf16.msra.mxu1 %v4031_v11  ;;  %3829 = vmatprep.mubr.msk.f32.mxu1 %vm4924_vm0, %v4925_v1 }
 0x201   : > { %4033 = vmatprep.subr.bf16.mxu1 %v4923_v0 }
 0x204   : > { %4035 = vmatpush3.bf16.msra.mxu1 %v4034_v14 }
 0x205   : > { %3843 = vmatprep.subr.mxu1 %v4925_v1 }
 0x207   : > { %3830 = vmatmul.mubr.msk.f32.vlgmr.msra.gmra.mrb[2].mxu1 %vm1097_vm1, %v5559_v10 }
 0x208   : > { %3845 = vmatprep.mubr.msk.f32.mxu1 %vm4924_vm0, %v4925_v1 }
 0x2cd   : > { %v1319_v31 = vpop.f32.mrb[0].mxu0 }
 0x2ce   : > { %v5595_v32 = vadd.f32 %v3657_v30, %v1319_v31  ;;  %v3842_v33 = vpop.f32.mrb[1].mxu0  ;;  %v1088_v31 = vld [vmem:[#allocation11 + $0x10] sm:$0xff] }
 0x2d2   : > { %v1167_v21 = vpop.f32.mrb[0].mxu1 }
 0x2d3   : > { %v3820_v22 = vpop.f32.mrb[1].mxu1  ;;  %v1168_v26 = vadd.f32 %v3653_v23, %v1167_v21 }
 0x2d5   : > { %v1323_v29 = vmul.f32 0.35355338, %v1168_v26 }
 0x2da   : > { %v1243_v25 = vpop.f32.mrb[2].mxu1 }
 0x2db   : > { %v1244_v27 = vadd.f32 %v3655_v24, %v1243_v25  ;;  %v3831_v28 = vpop.f32.mrb[3].mxu1 }
 0x2dc   : > { %v1086_v28 = vld [vmem:[#allocation11] sm:$0xff] }
 0x2dd   : > { %1653 = vrot.lane.b32.xlu1 %v1244_v27, %s5948_s12  ;;  %1487 = vrot.lane.b32.xlu0 %v1244_v27, %s5950_s23 }
 0x2de   : > { %3844 = vmatpush3.xpose.msk.msra.mxu1 %vm1324_vm2, %v1244_v27 }
 0x2df   : > { %3848 = vmatprep.subr.mxu1 %v4925_v1 }
 0x2e1   : > { %3846 = vmatmul.mubr.msk.f32.vlgmr.msra.gmra.mrb[4].mxu1 %vm1324_vm2, %v1323_v29  ;;  %1651 = vrot.lane.b32.xlu1 %v1323_v29, %s5948_s12 }
 0x2e2   : > { %1485 = vrot.lane.b32.xlu0 %v1323_v29, %s5950_s23  ;;  %3850 = vmatprep.mubr.msk.f32.mxu1 %vm4924_vm0, %v4925_v1 }
 0x2e3   : > { %3849 = vmatpush3.msra.mxu1 %v5595_v32 }
 0x2e4   : > { %3858 = vmatprep.subr.mxu1 %v4925_v1 }
 0x2e5   : > { %1816 = vrot.lane.b32.xlu1 %v1323_v29, %s5946_s6  ;;  %v1087_v29 = vld [vmem:[#allocation11 + $0x8] sm:$0xff] }
 0x2e6   : > { %1818 = vrot.lane.b32.xlu0 %v1244_v27, %s5946_s6  ;;  %v4043_v30 = vpack.c.bf16 %v1087_v29, %v1086_v28 }
 0x34f   : > { %v1488_v34 = vpop.permute.xlu0 %1487  ;;  %v1654_v35 = vpop.permute.xlu1 %1653 }
 0x350   : > { %3854 = vmatpush3.xpose.msk.msra.mxu0 %vm1324_vm2, %v1488_v34 }
 0x351   : > { %3863 = vmatprep.subr.mxu0 %v4925_v1 }
 0x353   : > { %v1652_v37 = vpop.permute.xlu1 %1651 }
 0x354   : > { %v1486_v36 = vpop.permute.xlu0 %1485 }
 0x355   : > { %3856 = vmatmul.mubr.msk.f32.vlgmr.msra.gmra.mrb[2].mxu0 %vm1324_vm2, %v1486_v36 }
 0x356   : > { %3864 = vmatpush3.xpose.msk.msra.mxu0 %vm1324_vm2, %v1654_v35  ;;  %3865 = vmatprep.mubr.msk.f32.mxu0 %vm4924_vm0, %v4925_v1 }
 0x357   : > { %3873 = vmatprep.subr.mxu0 %v4925_v1  ;;  %v1817_v39 = vpop.permute.xlu1 %1816 }
 0x358   : > { %v1819_v38 = vpop.permute.xlu0 %1818 }
 0x359   : > { %3866 = vmatmul.mubr.msk.f32.vlgmr.msra.gmra.mrb[4].mxu0 %vm1324_vm2, %v1652_v37 }
 0x35a   : > { %3874 = vmatpush3.xpose.msk.msra.mxu0 %vm1324_vm2, %v1819_v38  ;;  %3875 = vmatprep.mubr.msk.f32.mxu0 %vm4924_vm0, %v4925_v1 }
 0x35b   : > { %4042 = vmatprep.subr.bf16.mxu0 %v4923_v0 }
 0x35d   : > { %3876 = vmatmul.mubr.msk.f32.vlgmr.msra.gmra.mrb[6].mxu0 %vm1324_vm2, %v1817_v39 }
 0x35e   : > { %3891 = vmatprep.mubr.msk.f32.mxu0 %vm4924_vm0, %v4925_v1  ;;  %4044 = vmatpush3.bf16.msra.mxu0 %v4043_v30 }
 0x35f   : > { %4045 = vmatprep.subr.bf16.mxu0 %v4923_v0 }
 0x3b4   : > { %v1397_v40 = vpop.f32.mrb[4].mxu1 }
 0x3b5   : > { %v3847_v41 = vpop.f32.mrb[5].mxu1  ;;  %v1401_v42 = vsel %vm1324_vm2, %v1397_v40, -inf }
 0x3b6   : > { %1402 = vmax.xlane.f32.xlu0 %v1401_v42 }
 0x428   : > { %v1559_v43 = vpop.f32.mrb[2].mxu0 }
 0x429   : > { %v3857_v44 = vpop.f32.mrb[3].mxu0  ;;  %v1563_v45 = vsel %vm1324_vm2, %v1559_v43, -inf }
 0x42a   : > { %1564 = vmax.xlane.f32.xlu1 %v1563_v45 }
 0x42c   : > { %v1725_v46 = vpop.f32.mrb[4].mxu0 }
 0x42d   : > { %v3867_v47 = vpop.f32.mrb[5].mxu0  ;;  %v1729_v48 = vsel %vm1324_vm2, %v1725_v46, -inf }
 0x42e   : > { %1730 = vmax.xlane.f32.xlu0 %v1729_v48 }
 0x430   : > { %v1890_v49 = vpop.f32.mrb[6].mxu0 }
 0x431   : > { %v3877_v50 = vpop.f32.mrb[7].mxu0  ;;  %v1894_v51 = vsel %vm1324_vm2, %v1890_v49, -inf }
 0x432   : > { %1895 = vmax.xlane.f32.xlu0 %v1894_v51 }
 0x43b   : > { %1575 = vrot.lane.b32.xlu1 %v5595_v32, %s5950_s23  ;;  %s6035_s23 = smov 24  }
 0x443   : > { %v1403_v52 = vpop.xlane.xlu0 %1402 }
 0x444   : > { %v1404_v53 = vsub.f32 %v1397_v40, %v1403_v52 }
 0x446   : > { %v1405_v54 = vmul.f32 1.442695, %v1404_v53 }
 0x448   : > { %4350 = vpow2.f32 %v1405_v54 }
 0x452   : > { %v4351_v55 = vpop.eup %4350 }
 0x453   : > { %v1407_v56 = vsel %vm1324_vm2, %v4351_v55, 0.0 }
 0x45f   : > { %1408 = vadd.xlane.f32.xlu1 %v1407_v56 }
 0x4b7   : > { %v1565_v57 = vpop.xlane.xlu1 %1564 }
 0x4b8   : > { %v1566_v58 = vsub.f32 %v1559_v43, %v1565_v57  ;;  %v2112_v57 = vld [vmem:[#allocation14] sm:$0xff] }
 0x4ba   : > { %v1567_v59 = vmul.f32 1.442695, %v1566_v58  ;;  %v2113_v58 = vld [vmem:[#allocation14 + $0x8] sm:$0xff] }
 0x4bb   : > { %v1731_v60 = vpop.xlane.xlu0 %1730  ;;  %v1576_v11 = vpop.permute.xlu1 %1575 }
 0x4bc   : > { %4352 = vpow2.f32 %v1567_v59  ;;  %v1732_v61 = vsub.f32 %v1725_v46, %v1731_v60  ;;  %v3671_v46 = vld [vmem:[#allocation13] ss:$0 sm:$0xff]  ;;  %v4054_v59 = vpack.c.bf16 %v2113_v58, %v2112_v57  ;;  %v2114_v60 = vld [vmem:[#allocation14 + $0x10] sm:$0xff] }
 0x4be   : > { %v1733_v62 = vmul.f32 1.442695, %v1732_v61  ;;  %v2115_v61 = vld [vmem:[#allocation14 + $0x18] sm:$0xff] }
 0x4bf   : > { %v1896_v63 = vpop.xlane.xlu0 %1895 }
 0x4c0   : > { %4354 = vpow2.f32 %v1733_v62  ;;  %v1897_v2 = vsub.f32 %v1890_v49, %v1896_v63 }
 0x4c2   : > { %v1898_v3 = vmul.f32 1.442695, %v1897_v2 }
 0x4c4   : > { %4356 = vpow2.f32 %v1898_v3 }
 0x4c6   : > { %v4353_v4 = vpop.eup %4352 }
 0x4c7   : > { %v1569_v5 = vsel %vm1324_vm2, %v4353_v4, 0.0 }
 0x4c8   : > { %1570 = vadd.xlane.f32.xlu0 %v1569_v5 }
 0x4ca   : > { %v4355_v6 = vpop.eup %4354 }
 0x4cb   : > { %v1735_v7 = vsel %vm1324_vm2, %v4355_v6, 0.0 }
 0x4cc   : > { %1736 = vadd.xlane.f32.xlu1 %v1735_v7 }
 0x4ce   : > { %v4357_v8 = vpop.eup %4356 }
 0x4cf   : > { %v1900_v9 = vsel %vm1324_vm2, %v4357_v8, 0.0 }
 0x4d0   : > { %1901 = vadd.xlane.f32.xlu0 %v1900_v9 }
 0x4dd   : > { %1905 = vrot.lane.b32.xlu1 %v5595_v32, %s5946_s6  ;;  %s6025_s6 = sld [smem:[#allocation46_spill]] }
 0x4e3   : > { %v2108_v2 = vld [vmem:[%s6025_s6] sm:$0xff]  ;;  %v2109_v3 = vld [vmem:[%s6025_s6 + $0x8] sm:$0xff]  ;;  %v2110_v5 = vld [vmem:[%s6025_s6 + $0x10] sm:$0xff] }
 0x4e6   : > { %1740 = vrot.lane.b32.xlu0 %v5595_v32, %s5948_s12  ;;  %v1089_v32 = vld [vmem:[#allocation11 + $0x18] sm:$0xff]  ;;  %s6034_s12 = smov 8  }
 0x4e7   : > { %v4046_v33 = vpack.c.bf16 %v1089_v32, %v1088_v31  ;;  %v2116_v31 = vld [vmem:[#allocation16] sm:$0xff]  ;;  %v2117_v32 = vld [vmem:[#allocation16 + $0x8] sm:$0xff] }
 0x4e9   : > { %4047 = vmatpush3.bf16.msra.mxu0 %v4046_v33  ;;  %v2118_v33 = vld [vmem:[#allocation16 + $0x10] sm:$0xff] }
 0x4ea   : > { %4055 = vmatprep.subr.bf16.mxu0 %v4054_v59 }
 0x4ec   : > { %v1409_v12 = vpop.xlane.xlu1 %1408 }
 0x4ed   : > { %4358 = vrcp.f32 %v1409_v12 }
 0x4f7   : > { %v4359_v13 = vpop.eup %4358 }
 0x4f8   : > { %v1411_v14 = vmul.f32 %v4359_v13, %v4351_v55 }
 0x4fa   : > { %3851 = vmatmul.mubr.msk.f32.vlgmr.msra.gmra.mrb[6].mxu1 %vm1324_vm2, %v1411_v14 }
 0x4fb   : > { %3859 = vmatpush3.msra.mxu1 %v1576_v11  ;;  %3860 = vmatprep.mubr.msk.f32.mxu1 %vm4924_vm0, %v4925_v1 }
 0x4fc   : > { %3868 = vmatprep.subr.mxu1 %v4925_v1 }
 0x555   : > { %v1571_v15 = vpop.xlane.xlu0 %1570 }
 0x556   : > { %4360 = vrcp.f32 %v1571_v15  ;;  %v3674_v15 = vld [vmem:[%s6027_s19] ss:$0 sm:$0xff] }
 0x559   : > { %v1737_v16 = vpop.xlane.xlu1 %1736 }
 0x55a   : > { %4362 = vrcp.f32 %v1737_v16 }
 0x55d   : > { %v1902_v17 = vpop.xlane.xlu0 %1901  ;;  %v1906_v23 = vpop.permute.xlu1 %1905 }
 0x55e   : > { %4364 = vrcp.f32 %v1902_v17 }
 0x560   : > { %v4361_v18 = vpop.eup %4360 }
 0x561   : > { %v1573_v19 = vmul.f32 %v4361_v18, %v4353_v4  ;;  %v1741_v20 = vpop.permute.xlu0 %1740  ;;  %v4049_v4 = vpack.c.bf16 %v2109_v3, %v2108_v2  ;;  %v3677_v18 = vld [vmem:[#allocation19] ss:$0 sm:$0xff] }
 0x563   : > { %3861 = vmatmul.mubr.msk.f32.vlgmr.msra.gmra.mrb[8].mxu1 %vm1324_vm2, %v1573_v19 }
 0x564   : > { %v4363_v21 = vpop.eup %4362  ;;  %3869 = vmatpush3.msra.mxu1 %v1741_v20  ;;  %3870 = vmatprep.mubr.msk.f32.mxu1 %vm4924_vm0, %v4925_v1 }
 0x565   : > { %v1739_v22 = vmul.f32 %v4363_v21, %v4355_v6  ;;  %3878 = vmatprep.subr.mxu1 %v4925_v1  ;;  %v2111_v6 = vld [vmem:[%s6025_s6 + $0x18] sm:$0xff] }
 0x566   : > { %v4052_v7 = vpack.c.bf16 %v2111_v6, %v2110_v5 }
 0x567   : > { %3871 = vmatmul.mubr.msk.f32.vlgmr.msra.gmra.mrb[10].mxu1 %vm1324_vm2, %v1739_v22 }
 0x568   : > { %v4365_v24 = vpop.eup %4364  ;;  %3879 = vmatpush3.msra.mxu1 %v1906_v23  ;;  %3880 = vmatprep.mubr.msk.f32.mxu1 %vm4924_vm0, %v4925_v1 }
 0x569   : > { %v1904_v25 = vmul.f32 %v4365_v24, %v4357_v8  ;;  %4048 = vmatprep.subr.bf16.mxu1 %v4923_v0 }
 0x56b   : > { %3881 = vmatmul.mubr.msk.f32.vlgmr.msra.gmra.mrb[12].mxu1 %vm1324_vm2, %v1904_v25 }
 0x56c   : > { %3902 = vmatprep.mubr.msk.f32.mxu1 %vm4924_vm0, %v4925_v1  ;;  %4050 = vmatpush3.bf16.msra.mxu1 %v4049_v4 }
 0x56d   : > { %4051 = vmatprep.subr.bf16.mxu1 %v4923_v0 }
 0x570   : > { %4053 = vmatpush3.bf16.msra.mxu1 %v4052_v7 }
 0x5cd   : > { %v1481_v26 = vpop.f32.mrb[6].mxu1 }
 0x5ce   : > { %v3852_v27 = vpop.f32.mrb[7].mxu1 }
 0x636   : > { %v1647_v34 = vpop.f32.mrb[8].mxu1 }
 0x637   : > { %1982 = vrot.lane.b32.xlu1 %v1647_v34, %s5944_s1  ;;  %v3862_v35 = vpop.f32.mrb[9].mxu1  ;;  %s6026_s1 = sld [smem:[#allocation56_spill]]  ;;  %v4062_v34 = vpack.c.bf16 %v2117_v32, %v2116_v31 }
 0x638   : > { %v2119_v35 = vld [vmem:[#allocation16 + $0x18] sm:$0xff] }
 0x639   : > { %4063 = vmatprep.subr.bf16.mxu1 %v4062_v34 }
 0x63a   : > { %v1812_v36 = vpop.f32.mrb[10].mxu1 }
 0x63b   : > { %1986 = vrot.lane.b32.xlu0 %v1812_v36, %s5945_s29  ;;  %v3872_v37 = vpop.f32.mrb[11].mxu1  ;;  %v4066_v36 = vpack.c.bf16 %v2119_v35, %v2118_v33  ;;  %s6041_s29 = sld [smem:[#allocation60_spill]] }
 0x63d   : > { %v3673_v13 = vld [vmem:[%s6026_s1] ss:$0 sm:$0xff] }
 0x63e   : > { %v1977_v38 = vpop.f32.mrb[12].mxu1 }
 0x63f   : > { %1990 = vrot.lane.b32.xlu1 %v1977_v38, %s5943_s2  ;;  %v3882_v39 = vpop.f32.mrb[13].mxu1  ;;  %s1067_s2 = scalar_lea.vmem %s6024_s26, %s3713_s13  ;;  %s6030_s26 = smov 120  }
 0x640   : > { %v1069_v62 = vld [vmem:[%s1067_s2] sm:$0xff]  ;;  %v1070_v63 = vld [vmem:[%s1067_s2 + $0x8] sm:$0xff]  ;;  %s6032_s2 = smov 104   ;;  %s6033_s13 = smov 16  }
 0x6a9   : > { %v1983_v40 = vpop.permute.xlu1 %1982 }
 0x6aa   : > { %v1993_v42 = vsel %vm1324_vm2, %v1481_v26, %v1983_v40  ;;  %v3675_v26 = vld [vmem:[#allocation17] ss:$0 sm:$0xff] }
 0x6ad   : > { %v1987_v41 = vpop.permute.xlu0 %1986 }
 0x6ae   : > { %v1995_v43 = vsel %vm1994_vm3, %v1993_v42, %v1987_v41 }
 0x6b1   : > { %v1991_v44 = vpop.permute.xlu1 %1990 }
 0x6b2   : > { %v1997_v45 = vsel %vm1996_vm4, %v1995_v43, %v1991_v44 }
 0x6b3   : > { %3892 = vmatmul.mubr.msk.f32.vlgmr.msra.gmra.mrb[8].mxu0 %vm1097_vm1, %v1997_v45 }
 0x6b4   : > { %4057 = vmatpush3.bf16.msra.mxu0 %v4054_v59  ;;  %3913 = vmatprep.mubr.msk.f32.mxu0 %vm1097_vm1, %v1069_v62 }
 0x786   : > { %v2073_v47 = vpop.f32.mrb[8].mxu0 }
 0x787   : > { %v2074_v48 = vadd.f32 %v3671_v46, %v2073_v47  ;;  %v3893_v49 = vpop.f32.mrb[9].mxu0  ;;  %v3680_v47 = vld [vmem:[#allocation20] ss:$0 sm:$0xff] }
 0x789   : > { %v2079_v50 = vadd.f32 %v2074_v48, %v5559_v10  ;;  %v4058_v10 = vpack.c.bf16 %v2115_v61, %v2114_v60 }
 0x78b   : > { %v2080_v51 = vsel %vm1097_vm1, %v2079_v50, 0.0  ;;  %4059 = vmatprep.subr.bf16.mxu0 %v4058_v10 }
 0x78c   : > { %2081 = vadd.xlane.f32.xlu0 %v2080_v51  ;;  %4061 = vmatpush3.bf16.msra.mxu0 %v4058_v10 }
 0x78d   : > { %4070 = vmatprep.subr.bf16.mxu0 %v4923_v0 }
 0x78f   : > { %3914 = vmatmul.mubr.msk.f32.vlgmr.msra.gmra.mrb[10].mxu0 %vm1097_vm1, %v1070_v63 }
 0x790   : > { %3931 = vmatprep.mubr.msk.f32.mxu0 %vm4924_vm0, %v4925_v1 }
 0x819   : > { %v2082_v52 = vpop.xlane.xlu0 %2081 }
 0x81a   : > { %v2084_v53 = vmul.f32 0.03125, %v2082_v52 }
 0x81c   : > { %v2085_v54 = vsub.f32 %v2079_v50, %v2084_v53 }
 0x81e   : > { %v2086_v55 = vmul.f32 %v2085_v54, %v2085_v54 }
 0x820   : > { %v2087_v56 = vsel %vm1097_vm1, %v2086_v55, 0.0 }
 0x821   : > { %2088 = vadd.xlane.f32.xlu1 %v2087_v56 }
 0x862   : > { %v3915_v19 = vpop.f32.mrb[10].mxu0 }
 0x863   : > { %v2291_v20 = vadd.f32 %v3915_v19, %v3677_v18  ;;  %v2285_v21 = vpop.f32.mrb[11].mxu0 }
 0x864   : > { %v2286_v22 = vadd.f32 %v3677_v18, %v2285_v21 }
 0x866   : > { %v4071_v24 = vpack.c.bf16 %v2291_v20, %v2286_v22  ;;  %v5694_v25 = vpack.i.bf16 %v2291_v20, %v2286_v22 }
 0x868   : > { %4321 = vrot.lane.b32.xlu1 %v5694_v25, %s6030_s26  ;;  %4073 = vmatpush3.bf16.xpose.msk.msra.mxu0 %vm5690_vm5, %v4071_v24 }
 0x869   : > { %4081 = vmatprep.subr.bf16.mxu0 %v4923_v0 }
 0x8ae   : > { %v2089_v8 = vpop.xlane.xlu1 %2088 }
 0x8af   : > { %v2090_v9 = vmul.f32 0.03125, %v2089_v8 }
 0x8b1   : > { %v2091_v11 = vadd.f32 1e-05, %v2090_v9 }
 0x8b3   : > { %4366 = vrsqrt.f32 %v2091_v11 }
 0x8bd   : > { %v4367_v12 = vpop.eup %4366 }
 0x8be   : > { %v2093_v14 = vmul.f32 %v4367_v12, %v2085_v54 }
 0x8c0   : > { %v2100_v16 = vmul.f32 %v3673_v13, %v2093_v14 }
 0x8c2   : > { %v5683_v17 = vadd.f32 %v3674_v15, %v2100_v16 }
 0x8c4   : > { %3903 = vmatmul.mubr.msk.f32.vlgmr.msra.gmra.mrb[14].mxu1 %vm1097_vm1, %v5683_v17 }
 0x8c5   : > { %3924 = vmatprep.mubr.msk.f32.mxu1 %vm1097_vm1, %v1069_v62  ;;  %4065 = vmatpush3.bf16.msra.mxu1 %v4062_v34 }
 0x8c6   : > { %4067 = vmatprep.subr.bf16.mxu1 %v4066_v36 }
 0x8c9   : > { %4069 = vmatpush3.bf16.msra.mxu1 %v4066_v36 }
 0x8ca   : > { %4074 = vmatprep.subr.bf16.mxu1 %v4923_v0 }
 0x8cc   : > { %3925 = vmatmul.mubr.msk.f32.vlgmr.msra.gmra.mrb[16].mxu1 %vm1097_vm1, %v1070_v63 }
 0x8cd   : > { %3938 = vmatprep.mubr.msk.f32.mxu1 %vm4924_vm0, %v4925_v1 }
 0x8da   : > { %v4322_v53 = vpop.permute.xlu1 %4321 }
 0x8db   : > { %v4324_v54 = vunpack.i.h.bf16 %v4322_v53  ;;  %v4323_v55 = vunpack.i.l.bf16 %v4322_v53 }
 0x8dd   : > { %v4078_v58 = vpack.c.bf16 %v4324_v54, %v4323_v55 }
 0x997   : > { %v2203_v27 = vpop.f32.mrb[14].mxu1 }
 0x998   : > { %v2204_v28 = vadd.f32 %v3675_v26, %v2203_v27  ;;  %v3904_v29 = vpop.f32.mrb[15].mxu1 }
 0x99a   : > { %v5701_v30 = vmul.f32 0.35355338, %v2204_v28 }
 0x99c   : > { %3932 = vmatmul.mubr.msk.f32.vlgmr.msra.gmra.mrb[12].mxu0 %vm1324_vm2, %v5701_v30 }
 0x99d   : > { %3952 = vmatprep.mubr.msk.f32.mxu0 %vm4924_vm0, %v4925_v1 }
 0x99f   : > { %v3926_v40 = vpop.f32.mrb[16].mxu1 }
 0x9a0   : > { %v2366_v41 = vpop.f32.mrb[17].mxu1  ;;  %v2372_v48 = vadd.f32 %v3926_v40, %v3680_v47 }
 0x9a1   : > { %v2367_v49 = vadd.f32 %v3680_v47, %v2366_v41 }
 0x9a3   : > { %v4075_v50 = vpack.c.bf16 %v2372_v48, %v2367_v49  ;;  %v5713_v51 = vpack.i.bf16 %v2372_v48, %v2367_v49 }
 0x9a5   : > { %4076 = vmatpush3.bf16.msra.mxu1 %v4075_v50 }
 0x9a6   : > { %4077 = vmatprep.subr.bf16.mxu1 %v4923_v0 }
 0xa6f   : > { %v2451_v37 = vpop.f32.mrb[12].mxu0 }
 0xa70   : > { %v3933_v38 = vpop.f32.mrb[13].mxu0  ;;  %v2455_v39 = vsel %vm1994_vm3, %v2451_v37, -inf }
 0xa71   : > { %2456 = vmax.xlane.f32.xlu0 %v2455_v39 }
 0xafe   : > { %v2457_v42 = vpop.xlane.xlu0 %2456 }
 0xaff   : > { %v2458_v43 = vsub.f32 %v2451_v37, %v2457_v42 }
 0xb01   : > { %v2459_v44 = vmul.f32 1.442695, %v2458_v43 }
 0xb03   : > { %4368 = vpow2.f32 %v2459_v44 }
 0xb0d   : > { %v4369_v45 = vpop.eup %4368 }
 0xb0e   : > { %v2461_v46 = vsel %vm1994_vm3, %v4369_v45, 0.0 }
 0xb0f   : > { %2462 = vadd.xlane.f32.xlu0 %v2461_v46 }
 0xb25   : > { %2539 = vrot.lane.b32.xlu0 %v5701_v30, %s6030_s26 }
 0xb9c   : > { %v2463_v52 = vpop.xlane.xlu0 %2462 }
 0xb9d   : > { %4370 = vrcp.f32 %v2463_v52 }
 0xba0   : > { %v2540_v59 = vpop.permute.xlu0 %2539 }
 0xba7   : > { %v4371_v56 = vpop.eup %4370 }
 0xba8   : > { %v2465_v57 = vmul.f32 %v4371_v56, %v4369_v45 }
 0xbaa   : > { %3939 = vmatmul.mubr.msk.f32.vlgmr.msra.gmra.mrb[18].mxu1 %vm1994_vm3, %v2465_v57 }
 0xbab   : > { %4080 = vmatpush3.bf16.xpose.msk.msra.mxu1 %vm5690_vm5, %v4078_v58  ;;  %3945 = vmatprep.mubr.msk.f32.mxu1 %vm4924_vm0, %v4925_v1 }
 0xbac   : > { %4088 = vmatprep.subr.bf16.mxu1 %v4923_v0 }
 0xbb2   : > { %3946 = vmatmul.mubr.msk.f32.vlgmr.msra.gmra.mrb[20].mxu1 %vm1324_vm2, %v2540_v59 }
 0xbb3   : > { %3966 = vmatprep.mubr.msk.f32.mxu1 %vm4924_vm0, %v4925_v1 }
 0xc7d   : > { %v5727_v60 = vpop.f32.mrb[18].mxu1 }
 0xc7e   : > { %v3940_v61 = vpop.f32.mrb[19].mxu1 }
 0xc7f   : > { %v2123_v61 = vld [vmem:[#allocation22] sm:$0xff] }
 0xc85   : > { %v2617_v10 = vpop.f32.mrb[20].mxu1 }
 0xc86   : > { %v3947_v62 = vpop.f32.mrb[21].mxu1  ;;  %v2621_v63 = vsel %vm1994_vm3, %v2617_v10, -inf }
 0xc87   : > { %2622 = vmax.xlane.f32.xlu1 %v2621_v63  ;;  %v2125_v62 = vld [vmem:[#allocation22 + $0x10] sm:$0xff] }
 0xc98   : > { %4326 = vrot.lane.b32.xlu1 %v5713_v51, %s6030_s26 }
 0xc9c   : > { %2713 = vrot.lane.b32.xlu1 %v5701_v30, %s6031_s21 }
 0xd14   : > { %v2623_v2 = vpop.xlane.xlu1 %2622 }
 0xd15   : > { %v2624_v3 = vsub.f32 %v2617_v10, %v2623_v2  ;;  %v2124_v10 = vld [vmem:[#allocation22 + $0x8] sm:$0xff]  ;;  %v2126_v2 = vld [vmem:[#allocation22 + $0x18] sm:$0xff] }
 0xd16   : > { %v4099_v63 = vpack.c.bf16 %v2124_v10, %v2123_v61 }
 0xd17   : > { %v2625_v4 = vmul.f32 1.442695, %v2624_v3  ;;  %v4102_v3 = vpack.c.bf16 %v2126_v2, %v2125_v62 }
 0xd18   : > { %v4327_v5 = vpop.permute.xlu1 %4326 }
 0xd19   : > { %4372 = vpow2.f32 %v2625_v4  ;;  %v4329_v6 = vunpack.i.h.bf16 %v4327_v5  ;;  %v4328_v7 = vunpack.i.l.bf16 %v4327_v5 }
 0xd1b   : > { %v4082_v8 = vpack.c.bf16 %v4329_v6, %v4328_v7 }
 0xd1c   : > { %v2714_v20 = vpop.permute.xlu1 %2713 }
 0xd1d   : > { %4083 = vmatpush3.bf16.msra.mxu0 %v4082_v8 }
 0xd1e   : > { %4084 = vmatprep.subr.bf16.mxu0 %v4923_v0 }
 0xd23   : > { %v4373_v9 = vpop.eup %4372 }
 0xd24   : > { %v2627_v11 = vsel %vm1994_vm3, %v4373_v9, 0.0 }
 0xd25   : > { %2628 = vadd.xlane.f32.xlu0 %v2627_v11 }
 0xd3b   : > { %4331 = vrot.lane.b32.xlu0 %v5694_v25, %s6031_s21 }
 0xdb2   : > { %v2629_v12 = vpop.xlane.xlu0 %2628 }
 0xdb3   : > { %4374 = vrcp.f32 %v2629_v12 }
 0xdb6   : > { %v4332_v13 = vpop.permute.xlu0 %4331 }
 0xdb7   : > { %v4334_v14 = vunpack.i.h.bf16 %v4332_v13  ;;  %v4333_v15 = vunpack.i.l.bf16 %v4332_v13  ;;  %v3699_v13 = vld [vmem:[#allocation23] ss:$0 sm:$0xff] }
 0xdb9   : > { %v4085_v19 = vpack.c.bf16 %v4334_v14, %v4333_v15 }
 0xdbd   : > { %v4375_v16 = vpop.eup %4374 }
 0xdbe   : > { %v2631_v18 = vmul.f32 %v4375_v16, %v4373_v9 }
 0xdc0   : > { %3953 = vmatmul.mubr.msk.f32.vlgmr.msra.gmra.mrb[14].mxu0 %vm1994_vm3, %v2631_v18 }
 0xdc1   : > { %4087 = vmatpush3.bf16.xpose.msk.msra.mxu0 %vm5690_vm5, %v4085_v19  ;;  %3959 = vmatprep.mubr.msk.f32.mxu0 %vm4924_vm0, %v4925_v1 }
 0xdc2   : > { %4095 = vmatprep.subr.bf16.mxu0 %v4923_v0 }
 0xdc8   : > { %3960 = vmatmul.mubr.msk.f32.vlgmr.msra.gmra.mrb[16].mxu0 %vm1324_vm2, %v2714_v20 }
 0xdc9   : > { %3980 = vmatprep.mubr.msk.f32.mxu0 %vm4924_vm0, %v4925_v1 }
 0xe93   : > { %v2709_v21 = vpop.f32.mrb[14].mxu0 }
 0xe94   : > { %v3954_v22 = vpop.f32.mrb[15].mxu0 }
 0xe9b   : > { %v2791_v24 = vpop.f32.mrb[16].mxu0 }
 0xe9c   : > { %v3961_v26 = vpop.f32.mrb[17].mxu0  ;;  %v2795_v27 = vsel %vm1994_vm3, %v2791_v24, -inf }
 0xe9d   : > { %2796 = vmax.xlane.f32.xlu1 %v2795_v27  ;;  %v3181_v26 = vld [vmem:[#allocation25] sm:$0xff]  ;;  %v3182_v27 = vld [vmem:[#allocation25 + $0x8] sm:$0xff] }
 0xeae   : > { %4341 = vrot.lane.b32.xlu1 %v5694_v25, %s6032_s2 }
 0xeb2   : > { %2885 = vrot.lane.b32.xlu1 %v5701_v30, %s6032_s2 }
 0xf2a   : > { %v2797_v28 = vpop.xlane.xlu1 %2796 }
 0xf2b   : > { %v2798_v29 = vsub.f32 %v2791_v24, %v2797_v28  ;;  %v4105_v28 = vpack.c.bf16 %v3182_v27, %v3181_v26 }
 0xf2d   : > { %v2799_v31 = vmul.f32 1.442695, %v2798_v29  ;;  %v3184_v29 = vld [vmem:[#allocation25 + $0x18] sm:$0xff] }
 0xf2e   : > { %v4342_v38 = vpop.permute.xlu1 %4341 }
 0xf2f   : > { %4376 = vpow2.f32 %v2799_v31  ;;  %v4344_v39 = vunpack.i.h.bf16 %v4342_v38  ;;  %v4343_v40 = vunpack.i.l.bf16 %v4342_v38 }
 0xf31   : > { %v4092_v42 = vpack.c.bf16 %v4344_v39, %v4343_v40 }
 0xf32   : > { %v2886_v43 = vpop.permute.xlu1 %2885 }
 0xf39   : > { %v4377_v32 = vpop.eup %4376 }
 0xf3a   : > { %v2801_v33 = vsel %vm1994_vm3, %v4377_v32, 0.0 }
 0xf3b   : > { %2802 = vadd.xlane.f32.xlu0 %v2801_v33  ;;  %v3268_v33 = vld [vmem:[%s6036_s27 + $0x10] sm:$0xff] }
 0xf51   : > { %4336 = vrot.lane.b32.xlu0 %v5713_v51, %s6031_s21  ;;  %s6042_s21 = sld [smem:[#allocation61_spill]] }
 0xfc8   : > { %v2803_v34 = vpop.xlane.xlu0 %2802 }
 0xfc9   : > { %4378 = vrcp.f32 %v2803_v34 }
 0xfcc   : > { %v4337_v35 = vpop.permute.xlu0 %4336 }
 0xfcd   : > { %v4339_v36 = vunpack.i.h.bf16 %v4337_v35  ;;  %v4338_v37 = vunpack.i.l.bf16 %v4337_v35  ;;  %v3269_v35 = vld [vmem:[%s6036_s27 + $0x18] sm:$0xff] }
 0xfcf   : > { %v4089_v25 = vpack.c.bf16 %v4339_v36, %v4338_v37  ;;  %v4114_v36 = vpack.c.bf16 %v3269_v35, %v3268_v33  ;;  %v3270_v37 = vld [vmem:[%s6036_s27 + $0x20] sm:$0xff] }
 0xfd1   : > { %4090 = vmatpush3.bf16.msra.mxu1 %v4089_v25  ;;  %v3271_v25 = vld [vmem:[%s6036_s27 + $0x28] sm:$0xff] }
 0xfd2   : > { %4091 = vmatprep.subr.bf16.mxu1 %v4923_v0  ;;  %v4117_v38 = vpack.c.bf16 %v3271_v25, %v3270_v37 }
 0xfd3   : > { %v4379_v30 = vpop.eup %4378 }
 0xfd4   : > { %v2805_v41 = vmul.f32 %v4379_v30, %v4377_v32  ;;  %v3267_v32 = vld [vmem:[%s6036_s27 + $0x8] sm:$0xff] }
 0xfd6   : > { %3967 = vmatmul.mubr.msk.f32.vlgmr.msra.gmra.mrb[22].mxu1 %vm1994_vm3, %v2805_v41 }
 0xfd7   : > { %3973 = vmatprep.mubr.msk.f32.mxu1 %vm4924_vm0, %v4925_v1 }
 0xfda   : > { %4094 = vmatpush3.bf16.xpose.msk.msra.mxu1 %vm5690_vm5, %v4092_v42 }
 0xfdb   : > { %4104 = vmatprep.subr.bf16.mxu1 %v4923_v0 }
 0xfe1   : > { %3974 = vmatmul.mubr.msk.f32.vlgmr.msra.gmra.mrb[24].mxu1 %vm1324_vm2, %v2886_v43 }
 0xfe2   : > { %4002 = vmatprep.mubr.msk.f32.mxu1 %vm4924_vm0, %v4925_v1  ;;  %4106 = vmatpush3.bf16.msra.mxu1 %v4105_v28 }
 0xfe3   : > { %4107 = vmatprep.subr.bf16.mxu1 %v4923_v0 }
0x10a9   : > { %v2881_v44 = vpop.f32.mrb[22].mxu1 }
0x10aa   : > { %v3968_v45 = vpop.f32.mrb[23].mxu1 }
0x10b4   : > { %v2963_v46 = vpop.f32.mrb[24].mxu1 }
0x10b5   : > { %v3975_v47 = vpop.f32.mrb[25].mxu1  ;;  %v2967_v48 = vsel %vm1994_vm3, %v2963_v46, -inf }
0x10b6   : > { %2968 = vmax.xlane.f32.xlu0 %v2967_v48  ;;  %v3273_v47 = vld [vmem:[%s6036_s27 + $0x38] sm:$0xff] }
0x10cc   : > { %4346 = vrot.lane.b32.xlu0 %v5713_v51, %s6032_s2  ;;  %s6037_s2 = sld [smem:[#allocation58_spill]] }
0x10d0   : > { %3062 = vrot.lane.b32.xlu0 %v2881_v44, %s6033_s13  ;;  %s6043_s13 = sshll.u32 %s5493_s3, 3 }
0x10d2   : > { %v3701_v42 = vld [vmem:[%s6037_s2] ss:$0 sm:$0xff]  ;;  %s6039_s2 = sld [smem:[#allocation53_spill]] }
0x1143   : > { %v2969_v23 = vpop.xlane.xlu0 %2968 }
0x1144   : > { %v2970_v49 = vsub.f32 %v2963_v46, %v2969_v23  ;;  %v3703_v23 = vld [vmem:[%s6039_s2] ss:$0 sm:$0xff]  ;;  %s3710_s2 = sshll.u32 %s5099_s10, 7  ;;  %s4932_s10 = smov [#allocation26]  }
0x1145   : > { %s5843_s14 = scalar_lea.hbm %s6044_s7, %s3710_s2 }
0x1146   : > { %v2971_v50 = vmul.f32 1.442695, %v2970_v49 }
0x1147   : > { %v4347_v52 = vpop.permute.xlu0 %4346 }
0x1148   : > { %4380 = vpow2.f32 %v2971_v50  ;;  %v4349_v53 = vunpack.i.h.bf16 %v4347_v52  ;;  %v4348_v54 = vunpack.i.l.bf16 %v4347_v52 }
0x114a   : > { %v4096_v55 = vpack.c.bf16 %v4349_v53, %v4348_v54 }
0x114b   : > { %v3063_v8 = vpop.permute.xlu0 %3062 }
0x114c   : > { %4097 = vmatpush3.bf16.msra.mxu0 %v4096_v55 }
0x114d   : > { %4098 = vmatprep.subr.bf16.mxu0 %v4923_v0 }
0x1152   : > { %v4381_v56 = vpop.eup %4380 }
0x1153   : > { %v2973_v57 = vsel %vm1994_vm3, %v4381_v56, 0.0 }
0x1154   : > { %2974 = vadd.xlane.f32.xlu1 %v2973_v57 }
0x1165   : > { %3058 = vrot.lane.b32.xlu1 %v2709_v21, %s6034_s12  ;;  %s1062_s12 = scalar_lea.vmem [#allocation26], %s6043_s13 }
0x11e1   : > { %v2975_v51 = vpop.xlane.xlu1 %2974 }
0x11e2   : > { %4382 = vrcp.f32 %v2975_v51 }
0x11e5   : > { %v3059_v6 = vpop.permute.xlu1 %3058 }
0x11e6   : > { %v3069_v7 = vsel %vm1324_vm2, %v5727_v60, %v3059_v6  ;;  %v3707_v6 = vld [vmem:[%s6041_s29] ss:$0 sm:$0xff]  ;;  %s4814_s29 = sshll.u32 %s4932_s10, 4  ;;  %s4815_s29 = int_to_ptr.vmem [resolvable:$false] %s4814_s29 }
0x11e7   : > { %v3070_v9 = vsel %vm1994_vm3, %v3069_v7, %v3063_v8  ;;  %v3708_v8 = vld [vmem:[%s6042_s21] ss:$0 sm:$0xff]  ;;  %s4816_s19 = scalar_lea.vmem %s4815_s29, 256 }
0x11ec   : > { %v4383_v58 = vpop.eup %4382 }
0x11ed   : > { %v2977_v59 = vmul.f32 %v4383_v58, %v4381_v56 }
0x11ef   : > { %3981 = vmatmul.mubr.msk.f32.vlgmr.msra.gmra.mrb[18].mxu0 %vm1994_vm3, %v2977_v59 }
0x11f0   : > { %3991 = vmatprep.mubr.msk.f32.mxu0 %vm4924_vm0, %v4925_v1  ;;  %4100 = vmatpush3.bf16.msra.mxu0 %v4099_v63 }
0x11f1   : > { %4101 = vmatprep.subr.bf16.mxu0 %v4923_v0 }
0x11f4   : > { %4103 = vmatpush3.bf16.msra.mxu0 %v4102_v3 }
0x11f5   : > { %4110 = vmatprep.subr.bf16.mxu0 %v4923_v0 }
0x12c2   : > { %v3053_v4 = vpop.f32.mrb[18].mxu0 }
0x12c3   : > { %3066 = vrot.lane.b32.xlu1 %v3053_v4, %s6035_s23  ;;  %v3982_v5 = vpop.f32.mrb[19].mxu0  ;;  %s6038_s23 = sld [smem:[#allocation59_spill]] }
0x12c9   : > { %v3702_v44 = vld [vmem:[%s6038_s23] ss:$0 sm:$0xff]  ;;  %s6040_s23 = sld [smem:[#allocation55_spill]] }
0x12cf   : > { %v3705_v54 = vld [vmem:[%s6040_s23] ss:$0 sm:$0xff]  ;;  %s3400_s23 = sshll.u32 %s1062_s12, 4  ;;  %s5845_s23 = int_to_ptr.vmem [resolvable:$true] %s3400_s23 }
0x12d0   : > { %s4810_s1 = scalar_lea.vmem %s5845_s23, 128  ;;  %p4817_p7 = scmp.lt.s32.totalorder %s5845_s23, %s4815_s29 }
0x12d1   : > { %p4811_p10 = scmp.ne.s32.totalorder %s5845_s23, %s4810_s1  ;;  %p4818_p6 = scmp.lt.s32.totalorder %s4816_s19, %s4810_s1 }
0x12d3   : > { %p4812_p8 = pnand %p4811_p10, %p6045_p11  ;;  %p4819_p9 = por %p4818_p6, %p4817_p7 }
0x12d5   : > { %p4813_p5 = pneg %p4812_p8 }
0x12d7   : > { %p4820_p12 = pnand %p4819_p9, %p4813_p5 }
0x1335   : > { %v3067_v11 = vpop.permute.xlu1 %3066 }
0x1336   : > { %v3071_v12 = vsel %vm1996_vm4, %v3070_v9, %v3067_v11 }
0x1337   : > { %3992 = vmatmul.mubr.msk.f32.vlgmr.msra.gmra.mrb[20].mxu0 %vm1097_vm1, %v3071_v12 }
0x1338   : > { %4021 = vmatprep.mubr.msk.f32.mxu0 %vm4924_vm0, %v4925_v1  ;;  %v3183_v1 = vld [vmem:[#allocation25 + $0x10] sm:$0xff] }
0x1339   : > { %v4108_v31 = vpack.c.bf16 %v3184_v29, %v3183_v1 }
0x133b   : > { %4109 = vmatpush3.bf16.msra.mxu1 %v4108_v31 }
0x140a   : > { %v3147_v14 = vpop.f32.mrb[20].mxu0 }
0x140b   : > { %v3148_v15 = vadd.f32 %v3699_v13, %v3147_v14  ;;  %v3993_v16 = vpop.f32.mrb[21].mxu0 }
0x140d   : > { %v3153_v18 = vadd.f32 %v3148_v15, %v5683_v17  ;;  %v3266_v17 = vld [vmem:[%s6036_s27] sm:$0xff] }
0x140e   : > { %v4111_v34 = vpack.c.bf16 %v3267_v32, %v3266_v17 }
0x140f   : > { %v3154_v19 = vsel %vm1097_vm1, %v3153_v18, 0.0 }
0x1410   : > { %3155 = vadd.xlane.f32.xlu0 %v3154_v19  ;;  %4112 = vmatpush3.bf16.msra.mxu0 %v4111_v34 }
0x1411   : > { %4113 = vmatprep.subr.bf16.mxu0 %v4923_v0 }
0x1414   : > { %4115 = vmatpush3.bf16.msra.mxu0 %v4114_v36 }
0x1415   : > { %4116 = vmatprep.subr.bf16.mxu0 %v4923_v0 }
0x1418   : > { %4118 = vmatpush3.bf16.msra.mxu0 %v4117_v38 }
0x1419   : > { %4119 = vmatprep.subr.bf16.mxu0 %v4923_v0  ;;  %v3272_v0 = vld [vmem:[%s6036_s27 + $0x30] sm:$0xff] }
0x141a   : > { %v4120_v48 = vpack.c.bf16 %v3273_v47, %v3272_v0 }
0x141c   : > { %4121 = vmatpush3.bf16.msra.mxu0 %v4120_v48 }
0x149d   : > { %v3156_v60 = vpop.xlane.xlu0 %3155 }
0x149e   : > { %v3157_v20 = vmul.f32 0.03125, %v3156_v60 }
0x14a0   : > { %v3158_v21 = vsub.f32 %v3153_v18, %v3157_v20 }
0x14a2   : > { %v3159_v22 = vmul.f32 %v3158_v21, %v3158_v21 }
0x14a4   : > { %v3160_v24 = vsel %vm1097_vm1, %v3159_v22, 0.0 }
0x14a5   : > { %3161 = vadd.xlane.f32.xlu1 %v3160_v24 }
0x1532   : > { %v3162_v30 = vpop.xlane.xlu1 %3161 }
0x1533   : > { %v3163_v39 = vmul.f32 0.03125, %v3162_v30 }
0x1535   : > { %v3164_v40 = vadd.f32 1e-05, %v3163_v39 }
0x1537   : > { %4384 = vrsqrt.f32 %v3164_v40 }
0x1541   : > { %v4385_v41 = vpop.eup %4384 }
0x1542   : > { %v3166_v43 = vmul.f32 %v4385_v41, %v3158_v21 }
0x1544   : > { %v3173_v45 = vmul.f32 %v3701_v42, %v3166_v43 }
0x1546   : > { %v3180_v46 = vadd.f32 %v3702_v44, %v3173_v45 }
0x1548   : > { %4003 = vmatmul.mubr.msk.f32.vlgmr.msra.gmra.mrb[26].mxu1 %vm1097_vm1, %v3180_v46 }
0x161b   : > { %v3261_v49 = vpop.f32.mrb[26].mxu1 }
0x161c   : > { %v3262_v50 = vadd.f32 %v3703_v23, %v3261_v49  ;;  %v4004_v52 = vpop.f32.mrb[27].mxu1 }
0x161e   : > { %v3265_v53 = vmax.f32 %v3262_v50, 0.0 }
0x1620   : > { %4022 = vmatmul.mubr.msk.f32.vlgmr.msra.gmra.mrb[22].mxu0 %vm3281_vm6, %v3265_v53 }
0x16f3   : > { %v3351_v55 = vpop.f32.mrb[22].mxu0 }
0x16f4   : > { %v3352_v56 = vadd.f32 %v3705_v54, %v3351_v55  ;;  %v4023_v57 = vpop.f32.mrb[23].mxu0 }
0x16f6   : > { %v3357_v51 = vadd.f32 %v3352_v56, %v3180_v46 }
0x16f8   : > { %v3358_v58 = vsel %vm1097_vm1, %v3357_v51, 0.0 }
0x16f9   : > { %3359 = vadd.xlane.f32.xlu0 %v3358_v58 }
0x1786   : > { %v3360_v59 = vpop.xlane.xlu0 %3359 }
0x1787   : > { %v3361_v61 = vmul.f32 0.03125, %v3360_v59 }
0x1789   : > { %v3362_v10 = vsub.f32 %v3357_v51, %v3361_v61 }
0x178b   : > { %v3363_v62 = vmul.f32 %v3362_v10, %v3362_v10 }
0x178d   : > { %v3364_v63 = vsel %vm1097_vm1, %v3363_v62, 0.0 }
0x178e   : > { %3365 = vadd.xlane.f32.xlu0 %v3364_v63 }
0x181b   : > { %v3366_v2 = vpop.xlane.xlu0 %3365 }
0x181c   : > { %v3367_v3 = vmul.f32 0.03125, %v3366_v2 }
0x181e   : > { %v3368_v4 = vadd.f32 1e-05, %v3367_v3 }
0x1820   : > { %4386 = vrsqrt.f32 %v3368_v4 }
0x182a   : > { %v4387_v5 = vpop.eup %4386 }
0x182b   : > { %v3370_v7 = vmul.f32 %v4387_v5, %v3362_v10 }
0x182d   : > { %v3377_v9 = vmul.f32 %v3707_v6, %v3370_v7 }
0x182f   : > { %v3384_v11 = vadd.f32 %v3708_v8, %v3377_v9 }
0x1831   : > { %3385 = vst.msk [vmem:[%s1062_s12] sm:$0xff] %vm1097_vm1, %v3384_v11 }
0x1832   : > { %4823 = shalt.err (!%p4820_p12)
}
0x1833   : > { %s4824_s4 = scalar_lea.hbm %s5843_s14, 128  ;;  %s4828_s26 = scalar_lea.hbm %s6044_s7, 256 }
0x1834   : > { %p4825_p1 = scmp.ne.s32.totalorder %s5843_s14, %s4824_s4  ;;  %p4829_p2 = scmp.lt.u32.totalorder %s5843_s14, %s6044_s7 }
0x1835   : > { %p4830_p3 = scmp.lt.u32.totalorder %s4828_s26, %s4824_s4  ;;  %p4832_p10 = scmp.lt.u32.totalorder %s4824_s4, %s5843_s14 }
0x1836   : > { %p4826_p13 = pnand %p4825_p1, %p6045_p11 }
0x1837   : > { %p4831_p4 = por %p4830_p3, %p4829_p2 }
0x1838   : > { %p4827_p0 = pneg %p4826_p13 }
0x1839   : > { %p4833_p8 = por %p4832_p10, %p4831_p4 }
0x183b   : > { %p4834_p5 = pnand %p4833_p8, %p4827_p0 }
0x183d   : > { %4837 = shalt.err (!%p4834_p5)
}
0x183e   : > { %4180 = dma.vmem_to_hbm [thread:$0]  (%p6045_p11), %s5845_s23, 128, %s5843_s14, %s3387_s0  }
0x183f PF: > { %s3412_s13 = sand.u32 1, %s4892_s8   ;;  %p6046_p7 = scmp.ne.s32.totalorder %s6004_s22, 0 }
0x1840   : > { %p6047_p6 = scmp.ge.s32.totalorder %s4904_s30, 2  ;;  %s3413_s12 = scalar_lea.sflag [#allocation4], %s3412_s13 }
0x1842   : > { %p4230_p9 = pnand %p6047_p6, %p6046_p7 }
0x1844   : > { %4887 = dma.done.wait (!%p4230_p9), %s3413_s12, 128  }
0x1845   : > { %4889 = vsyncadd (!%p4230_p9), %s3413_s12, 4294967168  ;;  %p48_p12 = scmp.ge.s32.totalorder %s5417_s11, 4   ;;  %s6048_s8 = smov %s4896_s5 }
0x1846   : > { %s6049_s5 = smov %s4900_s9  ;;  %s6050_s9 = smov %s5428_s17 }
0x1847   : > { %s6051_s30 = smov %s5417_s11  ;;  %50 = sbr.rel (!%p48_p12) target bundleno = 40 (0x28), region = 236 }
0x184e   :  { %3418 = vsyncpa [#allocation3], 1 }
0x184f   :  { %3420 = vsyncpa [#allocation3 + $0x1], 1 }
0x1850   :  { %3421 = vsyncpa [#allocation6], 1 }
0x1851   :  { %3422 = vsyncpa [#allocation9], 1 }
0x1852   :  { %3423 = vsyncpa [#allocation12], 1 }
0x1853   :  { %3424 = vsyncpa [#allocation15], 1 }
0x1854   :  { %3425 = vsyncpa [#allocation18], 1 }
0x1855   :  { %3426 = vsyncpa [#allocation21], 1 }
0x1856   :  { %3427 = vsyncpa [#allocation24], 1 }
0x1857   :  { %3428 = vsyncpa [#allocation4], 1 }
0x1858   :  { %3430 = vsyncpa [#allocation4 + $0x1], 1 }

</bundles_post_ra>
